<compile_context>
chip_gen: v5e
topology: v5e:2x2
jax: 0.10.0
libtpu: 0.0.40
codegen_flags: <defaults>
</compile_context>

<pallas_src>
import jax
import jax.numpy as jnp
from jax.experimental import pallas as pl
from jax.experimental.pallas import tpu as pltpu


# ----------------------------------------------------------------------------
# Pallas kernel: valid 3x3 conv (taps pre/intra-expanded) + folded BN + ReLU
# ----------------------------------------------------------------------------
def _conv3x3_bn_relu_kernel(x_ref, w_ref, s_ref, b_ref, o_ref):
    # x_ref block : (1, H+2, TW, 3*Cin_p)  bf16  (W taps already in channels)
    # w_ref       : (9*Cin_p, Cout_p)      bf16
    # s_ref/b_ref : (1, Cout_p)            f32   (folded BatchNorm)
    # o_ref block : (1, H, TW, Cout_p)     f32
    H = o_ref.shape[1]
    TW = o_ref.shape[2]
    c_out_p = o_ref.shape[3]

    x = x_ref[0]                                       # (H+2, TW, 3*Cin_p)
    # Build the 3 H-taps -> full 3x3 im2col with K = 9*Cin_p.
    taps = jnp.concatenate([x[0:H], x[1:H + 1], x[2:H + 2]], axis=-1)
    t2 = taps.reshape(H * TW, taps.shape[-1])          # (H*TW, 9*Cin_p)

    # Single large MXU matmul, bf16 operands, f32 accumulation.
    acc = jnp.dot(t2, w_ref[...], preferred_element_type=jnp.float32)

    # Folded BN + ReLU in f32.
    z = jnp.maximum(acc * s_ref[...] + b_ref[...], 0.0)
    o_ref[0] = z.reshape(H, TW, c_out_p).astype(o_ref.dtype)


# ----------------------------------------------------------------------------
# Helpers
# ----------------------------------------------------------------------------
def _round_up(x, m):
    return ((x + m - 1) // m) * m


def _radial_pad_nhwc(x, p=1):
    """Replicate-pad H, circular-pad W (== RadialPad in the PyTorch module)."""
    x = jnp.pad(x, ((0, 0), (p, p), (0, 0), (0, 0)), mode="edge")
    x = jnp.pad(x, ((0, 0), (0, 0), (p, p), (0, 0)), mode="wrap")
    return x


def _bilinear_matrix(n_in, n_out):
    """Interpolation matrix for bilinear upsampling with align_corners=True."""
    if n_in == 1:
        return jnp.ones((n_out, 1), jnp.float32)
    pos = jnp.arange(n_out, dtype=jnp.float32) * (n_in - 1) / (n_out - 1)
    i0 = jnp.clip(jnp.floor(pos).astype(jnp.int32), 0, n_in - 2)
    frac = pos - i0.astype(jnp.float32)
    rows = jnp.arange(n_out)
    m = jnp.zeros((n_out, n_in), jnp.float32)
    m = m.at[rows, i0].add(1.0 - frac)
    m = m.at[rows, i0 + 1].add(frac)
    return m


def _pick_tile_w(W, H, c_in_p, c_out_p, budget_bytes):
    """Largest W tile (multiple of 16, divides W) whose buffers fit the budget,
    preferring >=2 tiles so the grid has more pipeline stages than B."""
    cands = [tw for tw in range(16, W + 1, 16) if W % tw == 0]
    if not cands:
        return W                      # full-dim block is always layout-legal

    def tile_bytes(tw):
        in_blk = (H + 2) * tw * 3 * c_in_p * 2      # bf16 input tile
        out_blk = H * tw * c_out_p * 4              # f32 output tile
        taps = H * tw * 9 * c_in_p * 2              # in-kernel im2col buffer
        return 2 * (in_blk + out_blk) + taps        # double-buffered I/O + scratch

    fitting = [tw for tw in cands if tile_bytes(tw) <= budget_bytes]
    if not fitting:
        return cands[0]
    sub_full = [tw for tw in fitting if tw < W]
    return max(sub_full) if sub_full else max(fitting)


# ----------------------------------------------------------------------------
# One conv stage: RadialPad -> 3x3 conv -> folded BN -> ReLU   (Pallas)
# ----------------------------------------------------------------------------
def _conv_stage_pallas(x_nhwc, w2d, scale, bias,
                       *, tile_budget_bytes=12 * 1024 * 1024):
    B, H, W, C = x_nhwc.shape
    c_in_p = w2d.shape[0] // 9
    c_out_p = w2d.shape[1]

    if C < c_in_p:                                   # lane-dense channel padding
        x_nhwc = jnp.pad(x_nhwc, ((0, 0), (0, 0), (0, 0), (0, c_in_p - C)))

    xp = _radial_pad_nhwc(x_nhwc)                    # (B, H+2, W+2, Cin_p)
    # Expand the 3 W-taps into channels -> halo-free W tiling in the kernel.
    xw3 = jnp.concatenate(
        [xp[:, :, 0:W, :], xp[:, :, 1:W + 1, :], xp[:, :, 2:W + 2, :]],
        axis=-1).astype(jnp.bfloat16)                # (B, H+2, W, 3*Cin_p)

    TW = _pick_tile_w(W, H, c_in_p, c_out_p, tile_budget_bytes)
    grid = (B, W // TW)

    return pl.pallas_call(
        _conv3x3_bn_relu_kernel,
        out_shape=jax.ShapeDtypeStruct((B, H, W, c_out_p), jnp.float32),
        grid_spec=pltpu.PrefetchScalarGridSpec(
            num_scalar_prefetch=0,
            grid=grid,
            in_specs=[
                pl.BlockSpec((1, H + 2, TW, 3 * c_in_p),
                             lambda b, w: (b, 0, w, 0)),
                pl.BlockSpec((9 * c_in_p, c_out_p), lambda b, w: (0, 0)),
                pl.BlockSpec((1, c_out_p), lambda b, w: (0, 0)),
                pl.BlockSpec((1, c_out_p), lambda b, w: (0, 0)),
            ],
            out_specs=pl.BlockSpec((1, H, TW, c_out_p),
                                   lambda b, w: (b, 0, w, 0)),
        ),
        compiler_params=pltpu.CompilerParams(
            dimension_semantics=("parallel", "parallel"),
            vmem_limit_bytes=32 * 1024 * 1024),
    )(xw3, w2d, scale, bias)


# ----------------------------------------------------------------------------
# Up.forward: upsample x1, pad to x2, concat, DoubleConv
# ----------------------------------------------------------------------------
def _up_merge_nhwc(x1_nchw, x2_nchw):
    """Bilinear x2 upsample (align_corners) of x1, pad to x2, concat [x2, x1]."""
    x1 = jnp.transpose(x1_nchw, (0, 2, 3, 1))
    x2 = jnp.transpose(x2_nchw, (0, 2, 3, 1))
    _, h1, w1, _ = x1.shape
    _, H2, W2, _ = x2.shape

    mh = _bilinear_matrix(h1, 2 * h1)
    mw = _bilinear_matrix(w1, 2 * w1)
    x1u = jnp.einsum("ph,bhwc->bpwc", mh, x1)
    x1u = jnp.einsum("qw,bpwc->bpqc", mw, x1u)

    diff_y = H2 - x1u.shape[1]
    diff_x = W2 - x1u.shape[2]
    x1u = jnp.pad(x1u, ((0, 0), (diff_y // 2, diff_y - diff_y // 2),
                        (0, 0), (0, 0)), mode="edge")
    x1u = jnp.pad(x1u, ((0, 0), (0, 0),
                        (diff_x // 2, diff_x - diff_x // 2), (0, 0)), mode="wrap")
    return jnp.concatenate([x2, x1u], axis=-1)


def up_forward_pallas(x1_nchw, x2_nchw, params):
    x = _up_merge_nhwc(x1_nchw, x2_nchw)
    y = _conv_stage_pallas(x, params["w1_2d"], params["s1_p"], params["b1_p"])
    y = _conv_stage_pallas(y, params["w2_2d"], params["s2_p"], params["b2_p"])
    y = y[..., :params["out_channels"]]              # drop lane padding
    return jnp.transpose(y, (0, 3, 1, 2))            # back to NCHW


# ----------------------------------------------------------------------------
# Plain-JAX f32 reference with identical semantics (for validation)
# ----------------------------------------------------------------------------
def _conv3x3_bn_relu_ref(x_nhwc, w4, s, b):
    B, H, W, _ = x_nhwc.shape
    xp = _radial_pad_nhwc(x_nhwc)
    z = jnp.zeros((B, H, W, w4.shape[-1]), jnp.float32)
    for kh in range(3):
        for kw in range(3):
            z = z + jnp.einsum("bhwc,co->bhwo",
                               xp[:, kh:kh + H, kw:kw + W, :], w4[kh, kw])
    return jnp.maximum(z * s + b, 0.0)


def up_forward_reference(x1_nchw, x2_nchw, params):
    x = _up_merge_nhwc(x1_nchw, x2_nchw)
    y = _conv3x3_bn_relu_ref(x, params["ref_w1"], params["ref_s1"], params["ref_b1"])
    y = _conv3x3_bn_relu_ref(y, params["ref_w2"], params["ref_s2"], params["ref_b2"])
    return jnp.transpose(y, (0, 3, 1, 2))


# ----------------------------------------------------------------------------
# Deterministic synthetic parameters (BN folded into scale/bias)
# ----------------------------------------------------------------------------
def init_params(key, in_channels, out_channels):
    eps = 1e-5
    ks = jax.random.split(key, 12)

    # conv1 / bn1  (torch layout: weight (Cout, Cin, 3, 3))
    w1 = jax.random.normal(ks[0], (out_channels, in_channels, 3, 3), jnp.float32) * 0.1
    cb1 = jax.random.normal(ks[1], (out_channels,), jnp.float32) * 0.1
    g1 = 1.0 + 0.1 * jax.random.normal(ks[2], (out_channels,), jnp.float32)
    be1 = 0.1 * jax.random.normal(ks[3], (out_channels,), jnp.float32)
    mu1 = 0.1 * jax.random.normal(ks[4], (out_channels,), jnp.float32)
    v1 = jnp.abs(1.0 + 0.1 * jax.random.normal(ks[5], (out_channels,), jnp.float32))

    # conv2 / bn2
    w2 = jax.random.normal(ks[6], (out_channels, out_channels, 3, 3), jnp.float32) * 0.1
    cb2 = jax.random.normal(ks[7], (out_channels,), jnp.float32) * 0.1
    g2 = 1.0 + 0.1 * jax.random.normal(ks[8], (out_channels,), jnp.float32)
    be2 = 0.1 * jax.random.normal(ks[9], (out_channels,), jnp.float32)
    mu2 = 0.1 * jax.random.normal(ks[10], (out_channels,), jnp.float32)
    v2 = jnp.abs(1.0 + 0.1 * jax.random.normal(ks[11], (out_channels,), jnp.float32))

    s1 = g1 / jnp.sqrt(v1 + eps)
    b1 = (cb1 - mu1) * s1 + be1
    s2 = g2 / jnp.sqrt(v2 + eps)
    b2 = (cb2 - mu2) * s2 + be2

    # kernel layout: (kh, kw, cin, cout)
    w1_4 = jnp.transpose(w1, (2, 3, 1, 0))
    w2_4 = jnp.transpose(w2, (2, 3, 1, 0))

    c_in_p = _round_up(in_channels, 128)
    c_out_p = _round_up(out_channels, 128)

    def pad_weight(w4, cin, cout, cin_p, cout_p):
        wp = jnp.zeros((3, 3, cin_p, cout_p), jnp.float32)
        wp = wp.at[:, :, :cin, :cout].set(w4)
        return wp.reshape(9 * cin_p, cout_p).astype(jnp.bfloat16)

    def pad_vec(v, cout_p):
        return jnp.zeros((1, cout_p), jnp.float32).at[0, :v.shape[0]].set(v)

    return {
        # padded / reshaped kernel parameters
        "w1_2d": pad_weight(w1_4, in_channels, out_channels, c_in_p, c_out_p),
        "s1_p": pad_vec(s1, c_out_p), "b1_p": pad_vec(b1, c_out_p),
        "w2_2d": pad_weight(w2_4, out_channels, out_channels, c_out_p, c_out_p),
        "s2_p": pad_vec(s2, c_out_p), "b2_p": pad_vec(b2, c_out_p),
        "out_channels": out_channels,
        # unpadded f32 copies for the reference path
        "ref_w1": w1_4, "ref_s1": s1, "ref_b1": b1,
        "ref_w2": w2_4, "ref_s2": s2, "ref_b2": b2,
    }


if __name__ == "__main__":
    key = jax.random.PRNGKey(0)
    k1, k2, kp = jax.random.split(key, 3)

    B = 2
    C1, C2, OUT = 4, 4, 8            # x1 channels, x2 (skip) channels, output channels
    x1 = jax.random.normal(k1, (B, C1, 8, 16), jnp.float32)    # low-res input
    x2 = jax.random.normal(k2, (B, C2, 16, 32), jnp.float32)   # skip connection
    params = init_params(kp, C1 + C2, OUT)

    out = up_forward_pallas(x1, x2, params)
    out = jax.block_until_ready(out)

    ref = up_forward_reference(x1, x2, params)
    assert out.shape == (B, OUT, 16, 32), out.shape
    max_err = float(jnp.max(jnp.abs(out - ref)))
    assert jnp.allclose(out, ref, atol=3e-2, rtol=3e-2), f"mismatch: {max_err}"

    print("KERNEL_OK")
</pallas_src>

<mosaic_0001>
module attributes {stable_mosaic.version = 11 : i64} {
  func.func @_conv3x3_bn_relu_kernel(%arg0: i32, %arg1: i32, %arg2: memref<1x18x16x384xbf16, #tpu.memory_space<vmem>>, %arg3: memref<1152x128xbf16, #tpu.memory_space<vmem>>, %arg4: memref<1x128xf32, #tpu.memory_space<vmem>>, %arg5: memref<1x128xf32, #tpu.memory_space<vmem>>, %arg6: memref<1x16x16x128xf32, #tpu.memory_space<vmem>>) attributes {dimension_semantics = [#tpu.dimension_semantics<parallel>, #tpu.dimension_semantics<parallel>], iteration_bounds = array<i64: 2, 2>, scalar_prefetch = 0 : i64, scratch_operands = 0 : i64, tpu.core_type = #tpu.core_type<tc>, window_params = [{transform_indices = @transform_0, window_bounds = array<i64: 1, 18, 16, 384>}, {pipeline_mode = #tpu.pipeline_mode<synchronous>, transform_indices = @transform_1, window_bounds = array<i64: 1152, 128>}, {pipeline_mode = #tpu.pipeline_mode<synchronous>, transform_indices = @transform_2, window_bounds = array<i64: 1, 128>}, {pipeline_mode = #tpu.pipeline_mode<synchronous>, transform_indices = @transform_3, window_bounds = array<i64: 1, 128>}, {transform_indices = @transform_4, window_bounds = array<i64: 1, 16, 16, 128>}]} {
    %c0 = arith.constant 0 : index
    %c0_0 = arith.constant 0 : index
    %c0_1 = arith.constant 0 : index
    %c0_2 = arith.constant 0 : index
    %0 = vector.load %arg2[%c0, %c0_0, %c0_1, %c0_2] : memref<1x18x16x384xbf16, #tpu.memory_space<vmem>>, vector<1x18x16x384xbf16>
    %1 = vector.shape_cast %0 : vector<1x18x16x384xbf16> to vector<18x16x384xbf16>
    %2 = vector.extract_strided_slice %1 {offsets = [0, 0, 0], sizes = [16, 16, 384], strides = [1, 1, 1]} : vector<18x16x384xbf16> to vector<16x16x384xbf16>
    %3 = vector.extract_strided_slice %1 {offsets = [1, 0, 0], sizes = [16, 16, 384], strides = [1, 1, 1]} : vector<18x16x384xbf16> to vector<16x16x384xbf16>
    %4 = vector.extract_strided_slice %1 {offsets = [2, 0, 0], sizes = [16, 16, 384], strides = [1, 1, 1]} : vector<18x16x384xbf16> to vector<16x16x384xbf16>
    %5 = tpu.concatenate %2, %3, %4 in 2 : vector<16x16x384xbf16>, vector<16x16x384xbf16>, vector<16x16x384xbf16> -> vector<16x16x1152xbf16>
    %6 = vector.shape_cast %5 : vector<16x16x1152xbf16> to vector<256x1152xbf16>
    %c0_3 = arith.constant 0 : index
    %c0_4 = arith.constant 0 : index
    %7 = vector.load %arg3[%c0_3, %c0_4] : memref<1152x128xbf16, #tpu.memory_space<vmem>>, vector<1152x128xbf16>
    %cst = arith.constant dense<0.000000e+00> : vector<256x128xf32>
    %8 = tpu.matmul %6, %7, %cst {dimension_numbers = #tpu.dot_dimension_numbers<[1], [0], [0], [1], [0, 0, 1, 1], [], []>} : vector<256x1152xbf16>, vector<1152x128xbf16>, vector<256x128xf32> -> vector<256x128xf32>
    %c0_5 = arith.constant 0 : index
    %c0_6 = arith.constant 0 : index
    %9 = vector.load %arg4[%c0_5, %c0_6] : memref<1x128xf32, #tpu.memory_space<vmem>>, vector<1x128xf32>
    %10 = vector.broadcast %9 : vector<1x128xf32> to vector<256x128xf32>
    %11 = arith.mulf %8, %10 : vector<256x128xf32>
    %c0_7 = arith.constant 0 : index
    %c0_8 = arith.constant 0 : index
    %12 = vector.load %arg5[%c0_7, %c0_8] : memref<1x128xf32, #tpu.memory_space<vmem>>, vector<1x128xf32>
    %13 = vector.broadcast %12 : vector<1x128xf32> to vector<256x128xf32>
    %14 = arith.addf %11, %13 : vector<256x128xf32>
    %cst_9 = arith.constant 0.000000e+00 : f32
    %15 = vector.broadcast %cst_9 : f32 to vector<256x128xf32>
    %16 = arith.maximumf %14, %15 : vector<256x128xf32>
    %17 = vector.shape_cast %16 : vector<256x128xf32> to vector<16x16x128xf32>
    %c0_10 = arith.constant 0 : index
    %c0_11 = arith.constant 0 : index
    %c0_12 = arith.constant 0 : index
    %c0_13 = arith.constant 0 : index
    %18 = vector.load %arg6[%c0_10, %c0_11, %c0_12, %c0_13] : memref<1x16x16x128xf32, #tpu.memory_space<vmem>>, vector<1x16x16x128xf32>
    %19 = vector.shape_cast %18 : vector<1x16x16x128xf32> to vector<16x16x128xf32>
    %20 = vector.shape_cast %17 : vector<16x16x128xf32> to vector<1x16x16x128xf32>
    tpu.vector_store %arg6[%c0_10, %c0_11, %c0_12, %c0_13], %20 {strides = array<i32>} : memref<1x16x16x128xf32, #tpu.memory_space<vmem>>, vector<1x16x16x128xf32>,
    return
  }
  func.func @transform_0(%arg0: i32, %arg1: i32) -> (i32, i32, i32, i32) {
    %c0_i32 = arith.constant 0 : i32
    %c0_i32_0 = arith.constant 0 : i32
    %c0_i32_1 = arith.constant 0 : i32
    return %arg0, %c0_i32, %arg1, %c0_i32_0 : i32, i32, i32, i32
  }
  func.func @transform_1(%arg0: i32, %arg1: i32) -> (i32, i32) {
    %c0_i32 = arith.constant 0 : i32
    %c0_i32_0 = arith.constant 0 : i32
    %c0_i32_1 = arith.constant 0 : i32
    return %c0_i32, %c0_i32_0 : i32, i32
  }
  func.func @transform_2(%arg0: i32, %arg1: i32) -> (i32, i32) {
    %c0_i32 = arith.constant 0 : i32
    %c0_i32_0 = arith.constant 0 : i32
    %c0_i32_1 = arith.constant 0 : i32
    return %c0_i32, %c0_i32_0 : i32, i32
  }
  func.func @transform_3(%arg0: i32, %arg1: i32) -> (i32, i32) {
    %c0_i32 = arith.constant 0 : i32
    %c0_i32_0 = arith.constant 0 : i32
    %c0_i32_1 = arith.constant 0 : i32
    return %c0_i32, %c0_i32_0 : i32, i32
  }
  func.func @transform_4(%arg0: i32, %arg1: i32) -> (i32, i32, i32, i32) {
    %c0_i32 = arith.constant 0 : i32
    %c0_i32_0 = arith.constant 0 : i32
    %c0_i32_1 = arith.constant 0 : i32
    return %arg0, %c0_i32, %arg1, %c0_i32_0 : i32, i32, i32, i32
  }
}

</mosaic_0001>

<bundles_post_ra>
// kernel: tpu_custom_call.1
= control target key start
LH: loop header
LB: loop body
LE: loop exit
PB: predicated region body
PF: predicated region fallthrough
CT: control target
= control target key end

     0   :  { %s4054_s0 = inlined_call_operand.hbm [shape: bf16[2,18,32,384], index: 0, kind: input, shape index: {}]   ;;  %s4055_s1 = inlined_call_operand.hbm [shape: bf16[1152,128], index: 1, kind: input, shape index: {}]   ;;  %s4056_s2 = inlined_call_operand.vmem [shape: f32[1,128], index: 2, kind: input, shape index: {}]   ;;  %s4057_s3 = inlined_call_operand.vmem [shape: f32[1,128], index: 3, kind: input, shape index: {}]   ;;  %s4058_s4 = inlined_call_operand.hbm [shape: f32[2,16,32,128], index: 4, kind: output, shape index: {}]  }
   0x1   :  { %4080 = sst [smem:[#allocation53_spill]] %s4055_s1 }
   0x2   :  { %9 = vsyncpa [#allocation3], 0 }
   0x3   :  { %11 = vsyncpa [#allocation3 + $0x1], 0 }
   0x4   :  { %12 = vsyncpa [#allocation6], 0 }
   0x5   :  { %13 = vsyncpa [#allocation4], 0 }
   0x6   :  { %15 = vsyncpa [#allocation4 + $0x1], 0  ;;  %s3233_s15 = smov 0   ;;  %s3235_s16 = smov 0  }
   0x7   :  { %s3237_s17 = smov 0   ;;  %s3239_s18 = smov 0  }
   0x8   :  { %s3241_s19 = smov 0   ;;  %s3243_s20 = smov 0  }
   0x9   :  { %s3245_s21 = smov 0   ;;  %s3247_s22 = smov 0  }
   0xa LB: > { %4081 = sst [smem:[#allocation16_spill]] %s3170_s17  ;;  %s2295_s23 = sadd.s32 4294967295, %s3190_s22   ;;  %s3190_s22 = sphi %s3247_s22, %s21_s22   ;;  %s3186_s21 = sphi %s3245_s21, %s4161_s21   ;;  %s3182_s20 = sphi %s3243_s20, %s4160_s20   ;;  %s3178_s19 = sphi %s3241_s19, %s4159_s19   ;;  %s3174_s18 = sphi %s3239_s18, %s4158_s18   ;;  %s3170_s17 = sphi %s3237_s17, %s4157_s17   ;;  %s3166_s16 = sphi %s3235_s16, %s4163_s16   ;;  %s3162_s15 = sphi %s3233_s15, %s4162_s15  }
   0xb   : > { %4082 = sst [smem:[#allocation17_spill]] %s3182_s20  ;;  %s2296_s24 = sadd.s32 4294967294, %s3190_s22  }
   0xc   : > { %4083 = sst [smem:[#allocation18_spill]] %s3186_s21  ;;  %s30_s25 = sadd.s32 1, %s3182_s20 }
   0xd   : > { %s33_s26 = sadd.s32 1, %s3186_s21  ;;  %p31_p0 = scmp.ge.s32.totalorder %s30_s25, 2 }
   0xe   : > { %s42_s27 = sadd.s32 1, %s3170_s17  ;;  %p49_p1 = scmp.ne.s32.totalorder %s3170_s17, %s3166_s16 }
   0xf   : > { %p50_p2 = scmp.eq.s32.totalorder %s3190_s22, 0  ;;  %s4165_s25 = smov (%p31_p0, %s30_s25), 0 }
  0x10   : > { %4084 = sst [smem:[#allocation19_spill]] %s4165_s25  ;;  %s4167_s26 = smov (!%p31_p0, %s33_s26), %s3186_s21 }
  0x11   : > { %s38_s28 = ssub.s32 %s3182_s20, %s4165_s25  ;;  %p3286_p3 = por %p50_p2, %p49_p1 }
  0x12   : > { %p35_p4 = scmp.ge.s32.totalorder %s4167_s26, 2  ;;  %p55_p5 = scmp.ne.s32.totalorder %s3166_s16, %s3162_s15 }
  0x13   : > { %p3292_p6 = scmp.eq.s32.totalorder %s2295_s23, 0  ;;  %p144_p7 = scmp.eq.s32.totalorder %s2295_s23, 3 }
  0x14   : > { %s4169_s26 = smov (%p35_p4, %s4167_s26), 0  ;;  %p150_p10 = scmp.eq.s32.totalorder %s2296_s24, 3 }
  0x15   : > { %4087 = sst [smem:[#allocation20_spill]] %s4169_s26  ;;  %p3300_p8 = por %p3292_p6, %p55_p5 }
  0x16   : > { %p3304_p9 = por %p144_p7, %p49_p1  ;;  %s37_s7 = ssub.s32 %s3186_s21, %s4169_s26 }
  0x17   : > { %s39_s8 = sor.u32 %s38_s28, %s37_s7  ;;  %p2297_p11 = scmp.ge.s32.totalorder %s3190_s22, 1 }
  0x18   : > { %p40_p12 = scmp.eq.s32.totalorder %s39_s8, 0  ;;  %p3311_p13 = por %p150_p10, %p55_p5 }
  0x19   : > { %p157_p0 = scmp.lt.s32.totalorder %s3190_s22, 5  ;;  %s4094_s1 = sld [smem:[#allocation53_spill]] }
  0x1a   : > { %s4090_s9 = scalar_select %p3311_p13, 1, 0 }
  0x1b   : > { %s3317_s10 = scalar_select %p40_p12, %s3170_s17, %s42_s27  }
  0x1c   : > { %4091 = sst [smem:[#allocation21_spill]] %s4090_s9  ;;  %p3319_p2 = pnand %p2297_p11, %p157_p0 }
  0x1d   : > { %4092 = sst [smem:[#allocation22_spill]] %s3317_s10  ;;  %s3192_s23 = smov [#allocation5]  }
  0x1e   : > { %p2993_p1 = pneg %p3319_p2  ;;  %s170_s24 = sshll.u32 %s3192_s23, 4  ;;  %s171_s24 = int_to_ptr.vmem [resolvable:$true] %s170_s24 }
  0x1f   : > { %s168_s14 = sshll.u32 %s4094_s1, 4  ;;  %s3193_s28 = smov 64   ;;  %s169_s14 = int_to_ptr.hbm [resolvable:$true] %s168_s14 }
  0x20   : > { %p2994_p4 = pnand %p2993_p1, %p3292_p6  ;;  %s3194_s27 = smov 4  }
  0x21   : > { %p2299_p5 = scmp.ge.s32.totalorder %s3190_s22, 4 }
  0x22   : > { %2996 = dma.hbm_to_vmem [thread:$0]  (!%p2994_p4), %s169_s14, 9216, %s171_s24, [#allocation6], %s3193_s28, %s3193_s28, %s3194_s27  }
  0x23   : > { %186 = sbr.rel (%p2299_p5) target bundleno = 57 (0x39), region = 28 }
  0x28   : > { %s190_s7 = sand.u32 1, %s3170_s17   ;;  %s2969_s8 = smul.u32 6, %s3182_s20 }
  0x29   : > { %s2968_s12 = smul.u32 432, %s190_s7  ;;  %s3195_s23 = smov 768  }
  0x2a   : > { %s2970_s13 = smul.u32 216, %s3186_s21  ;;  %2975 = sst [smem:[#allocation9]] (%p3286_p3), %s3195_s23 }
  0x2b   : > { %s2974_s26 = scalar_select %p3286_p3, [#allocation0], [#allocation12] }
  0x2c   : > { %s200_s1 = sadd.s32 %s2970_s13, %s2969_s8  ;;  %s194_s25 = scalar_lea.vmem [#allocation2], %s2968_s12 }
  0x2d   : > { %s2302_s14 = sshll.u32 %s200_s1, 2  ;;  %s217_s10 = sshll.u32 %s194_s25, 4  ;;  %s218_s10 = int_to_ptr.vmem [resolvable:$true] %s217_s10 }
  0x2e   : > { %s202_s27 = scalar_lea.hbm %s4054_s0, %s2302_s14  ;;  %s3196_s20 = smov 384  }
  0x2f   : > { %2976 = sst [smem:[#allocation9 + $0x1]] (%p3286_p3), %s3196_s20  ;;  %s215_s17 = sshll.u32 %s202_s27, 4  ;;  %s216_s17 = int_to_ptr.hbm [resolvable:$true] %s215_s17 }
  0x30   : > { %s207_s21 = sld [smem:[%s2974_s26]]   ;;  %s3197_s9 = smov 2  }
  0x31   : > { %2977 = sst [smem:[#allocation9 + $0x2]] (%p3286_p3), %s3197_s9  ;;  %s3198_s1 = smov 192  }
  0x32   : > { %2978 = sst [smem:[#allocation9 + $0x3]] (%p3286_p3), %s3198_s1  ;;  %s3199_s8 = smov 12  }
  0x33   : > { %2979 = sst [smem:[#allocation9 + $0x4]] (%p3286_p3), %s3198_s1  ;;  %s191_s13 = scalar_lea.sflag [#allocation3], %s190_s7 }
  0x34   : > { %2980 = sst [smem:[#allocation9 + $0x5]] (%p3286_p3), %s3199_s8  ;;  %s3200_s20 = smov [#allocation8]  }
  0x36   : > { %s2303_s25 = sshll.u32 %s207_s21, 26 }
  0x37   : > { %s2304_s12 = sadd.s32 134217728, %s2303_s25 }
  0x38   : > { %2981 = dma.general (%p3286_p3), %s216_s17, 6912, %s218_s10, %s191_s13, %s3200_s20, [#allocation9], %s2304_s12, 0  }
  0x39 PF: > { %242 = sbr.rel (%p3319_p2) target bundleno = 825 (0x339), region = 36 }
  0x3e   : > { %s3356_s26 = sand.u32 1, %s3166_s16  }
  0x3f   : > { %s2971_s9 = smul.u32 432, %s3356_s26  ;;  %s245_s23 = scalar_lea.sflag [#allocation3], %s3356_s26 }
  0x41   : > { %s3360_s14 = scalar_lea.vmem [#allocation2], %s2971_s9 }
  0x42   : > { %3149 = dma.done.wait (%p3300_p8), %s245_s23, 6912  }
  0x43   : > { %3151 = vsyncadd (%p3300_p8), %s245_s23, 4294960384 }
  0x44   : > { %3153 = dma.done.wait (%p3292_p6), [#allocation6], 9216  }
  0x45   : > { %3155 = vsyncadd (%p3292_p6), [#allocation6], 4294958080  ;;  %v2879_v0 = vld [vmem:[#allocation5 + $0x38] sm:$0xff]  ;;  %v2878_v1 = vld [vmem:[#allocation5 + $0x30] sm:$0xff]  ;;  %s2307_s5 = sshll.u32 %s3356_s26, 8  ;;  %s2155_s11 = scalar_lea.sflag [#allocation4], %s3356_s26 }
  0x46   : > { %2944 = vmatpush.bf16.msra.mxu1 %v2879_v0  ;;  %2945 = vmatpush.bf16.msra.mxu2 %v2879_v0  ;;  %v2877_v2 = vld [vmem:[#allocation5 + $0x28] sm:$0xff]  ;;  %v2876_v3 = vld [vmem:[#allocation5 + $0x20] sm:$0xff]  ;;  %v2875_v4 = vld [vmem:[#allocation5 + $0x18] sm:$0xff]  ;;  %s3848_s10 = scalar_lea.vmem [#allocation7], %s2307_s5 }
  0x47   : > { %2946 = vmatpush.bf16.msra.mxu3 %v2879_v0  ;;  %1217 = vmatpush.bf16.msra.mxu0 %v2879_v0  ;;  %v2874_v5 = vld [vmem:[#allocation5 + $0x10] sm:$0xff]  ;;  %v2873_v6 = vld [vmem:[#allocation5 + $0x8] sm:$0xff]  ;;  %v2872_v7 = vld [vmem:[#allocation5] sm:$0xff] }
  0x48   : > { %v2358_v8 = vld [vmem:[%s3360_s14 + $0x60] sm:$0xf]  ;;  %v2831_v9 = vld [vmem:[%s3360_s14 + $0x68] sm:$0xf0]  ;;  %v2370_v32 = vld [vmem:[%s3360_s14 + $0x78] sm:$0xf] }
  0x49   : > { %v2406_v10 = vld [vmem:[%s3360_s14 + $0xc0] sm:$0xf]  ;;  %v2843_v11 = vld [vmem:[%s3360_s14 + $0xc8] sm:$0xf0]  ;;  %v3378_v18 = vor.u32 %v2831_v9, %v2358_v8  ;;  %v2834_v35 = vld [vmem:[%s3360_s14 + $0x80] sm:$0xf0] }
  0x4a   : > { %2947 = vmatpush.bf16.msra.mxu1 %v2878_v1  ;;  %2948 = vmatpush.bf16.msra.mxu2 %v2878_v1  ;;  %v2454_v12 = vld [vmem:[%s3360_s14 + $0x120] sm:$0xf]  ;;  %v2855_v13 = vld [vmem:[%s3360_s14 + $0x128] sm:$0xf0]  ;;  %v3380_v19 = vor.u32 %v2843_v11, %v2406_v10  ;;  %v2418_v36 = vld [vmem:[%s3360_s14 + $0xd8] sm:$0xf]  ;;  %v3395_v46 = vor.u32 %v2834_v35, %v2370_v32 }
  0x4b   : > { %2949 = vmatpush.bf16.msra.mxu3 %v2878_v1  ;;  %1218 = vmatpush.bf16.msra.mxu0 %v2878_v1  ;;  %v2310_v14 = vld [vmem:[%s3360_s14] sm:$0xf]  ;;  %v2819_v15 = vld [vmem:[%s3360_s14 + $0x8] sm:$0xf0]  ;;  %v3382_v20 = vor.u32 %v2855_v13, %v2454_v12  ;;  %v2846_v37 = vld [vmem:[%s3360_s14 + $0xe0] sm:$0xf0] }
  0x4c   : > { %v2895_v16 = vld [vmem:[#allocation5 + $0xb8] sm:$0xff]  ;;  %4095 = vst [vmem:[#allocation23_spill] sm:$0xff] %v3380_v19  ;;  %v2311_v21 = vor.u32 %v2819_v15, %v2310_v14  ;;  %v2894_v24 = vld [vmem:[#allocation5 + $0xb0] sm:$0xff]  ;;  %v2893_v28 = vld [vmem:[#allocation5 + $0xa8] sm:$0xff]  ;;  %v3397_v47 = vor.u32 %v2846_v37, %v2418_v36 }
  0x4d   : > { %v2903_v17 = vld [vmem:[#allocation5 + $0xf8] sm:$0xff]  ;;  %4096 = vst [vmem:[#allocation24_spill] sm:$0xff] %v3382_v20  ;;  %v2902_v25 = vld [vmem:[#allocation5 + $0xf0] sm:$0xff]  ;;  %v2901_v29 = vld [vmem:[#allocation5 + $0xe8] sm:$0xff] }
  0x4e   : > { %2950 = vmatpush.bf16.msra.mxu1 %v2877_v2  ;;  %2951 = vmatpush.bf16.msra.mxu2 %v2877_v2  ;;  %v2887_v22 = vld [vmem:[#allocation5 + $0x78] sm:$0xff]  ;;  %v2886_v26 = vld [vmem:[#allocation5 + $0x70] sm:$0xff]  ;;  %v2885_v30 = vld [vmem:[#allocation5 + $0x68] sm:$0xff]  ;;  %4097 = vst [vmem:[#allocation25_spill] sm:$0xff] %v3397_v47 }
  0x4f   : > { %2952 = vmatpush.bf16.msra.mxu3 %v2877_v2  ;;  %1219 = vmatpush.bf16.msra.mxu0 %v2877_v2  ;;  %v2911_v23 = vld [vmem:[#allocation5 + $0x138] sm:$0xff]  ;;  %v2910_v27 = vld [vmem:[#allocation5 + $0x130] sm:$0xff]  ;;  %v2909_v31 = vld [vmem:[#allocation5 + $0x128] sm:$0xff] }
  0x50   : > { %v2892_v33 = vld [vmem:[#allocation5 + $0xa0] sm:$0xff]  ;;  %v2466_v38 = vld [vmem:[%s3360_s14 + $0x138] sm:$0xf]  ;;  %v2890_v52 = vld [vmem:[#allocation5 + $0x90] sm:$0xff] }
  0x51   : > { %v2900_v34 = vld [vmem:[#allocation5 + $0xe0] sm:$0xff]  ;;  %v2322_v40 = vld [vmem:[%s3360_s14 + $0x18] sm:$0xf]  ;;  %v2898_v53 = vld [vmem:[#allocation5 + $0xd0] sm:$0xff] }
  0x52   : > { %2953 = vmatpush.bf16.msra.mxu1 %v2876_v3  ;;  %2954 = vmatpush.bf16.msra.mxu2 %v2876_v3  ;;  %v2858_v39 = vld [vmem:[%s3360_s14 + $0x140] sm:$0xf0]  ;;  %v2891_v44 = vld [vmem:[#allocation5 + $0x98] sm:$0xff]  ;;  %v2889_v56 = vld [vmem:[#allocation5 + $0x88] sm:$0xff] }
  0x53   : > { %2955 = vmatpush.bf16.msra.mxu3 %v2876_v3  ;;  %1220 = vmatpush.bf16.msra.mxu0 %v2876_v3  ;;  %v2822_v41 = vld [vmem:[%s3360_s14 + $0x20] sm:$0xf0]  ;;  %v2899_v45 = vld [vmem:[#allocation5 + $0xd8] sm:$0xff]  ;;  %v3399_v48 = vor.u32 %v2858_v39, %v2466_v38  ;;  %v2897_v57 = vld [vmem:[#allocation5 + $0xc8] sm:$0xff] }
  0x54   : > { %v2884_v42 = vld [vmem:[#allocation5 + $0x60] sm:$0xff]  ;;  %v3401_v49 = vor.u32 %v2822_v41, %v2322_v40  ;;  %v2883_v50 = vld [vmem:[#allocation5 + $0x58] sm:$0xff]  ;;  %v2882_v54 = vld [vmem:[#allocation5 + $0x50] sm:$0xff] }
  0x55   : > { %v2908_v43 = vld [vmem:[#allocation5 + $0x120] sm:$0xff]  ;;  %v2907_v51 = vld [vmem:[#allocation5 + $0x118] sm:$0xff]  ;;  %v2906_v55 = vld [vmem:[#allocation5 + $0x110] sm:$0xff] }
  0x56   : > { %2956 = vmatpush.bf16.msra.mxu1 %v2875_v4  ;;  %2957 = vmatpush.bf16.msra.mxu2 %v2875_v4  ;;  %v2881_v58 = vld [vmem:[#allocation5 + $0x48] sm:$0xff]  ;;  %v2382_v60 = vld [vmem:[%s3360_s14 + $0x90] sm:$0xf]  ;;  %v2927_v12 = vld [vmem:[#allocation5 + $0x1b8] sm:$0xff] }
  0x57   : > { %2958 = vmatpush.bf16.msra.mxu3 %v2875_v4  ;;  %1221 = vmatpush.bf16.msra.mxu0 %v2875_v4  ;;  %v2905_v59 = vld [vmem:[#allocation5 + $0x108] sm:$0xff]  ;;  %v2888_v61 = vld [vmem:[#allocation5 + $0x80] sm:$0xff]  ;;  %v2935_v13 = vld [vmem:[#allocation5 + $0x1f8] sm:$0xff] }
  0x58   : > { %v2896_v62 = vld [vmem:[#allocation5 + $0xc0] sm:$0xff]  ;;  %v2837_v63 = vld [vmem:[%s3360_s14 + $0x98] sm:$0xf0]  ;;  %v2324_v36 = vld [vmem:[%s3360_s14 + $0x24] sm:$0xf0] }
  0x59   : > { %v2430_v0 = vld [vmem:[%s3360_s14 + $0xf0] sm:$0xf]  ;;  %v2849_v1 = vld [vmem:[%s3360_s14 + $0xf8] sm:$0xf0]  ;;  %v3415_v8 = vor.u32 %v2837_v63, %v2382_v60 }
  0x5a   : > { %2959 = vmatpush.bf16.msra.mxu1 %v2874_v5  ;;  %2960 = vmatpush.bf16.msra.mxu2 %v2874_v5  ;;  %v2478_v2 = vld [vmem:[%s3360_s14 + $0x150] sm:$0xf]  ;;  %v2861_v3 = vld [vmem:[%s3360_s14 + $0x158] sm:$0xf0]  ;;  %v3417_v9 = vor.u32 %v2849_v1, %v2430_v0  ;;  %v2830_v1 = vld [vmem:[%s3360_s14 + $0x64] sm:$0xf] }
  0x5b   : > { %2961 = vmatpush.bf16.msra.mxu3 %v2874_v5  ;;  %1222 = vmatpush.bf16.msra.mxu0 %v2874_v5  ;;  %v2334_v4 = vld [vmem:[%s3360_s14 + $0x30] sm:$0xf]  ;;  %v2825_v5 = vld [vmem:[%s3360_s14 + $0x38] sm:$0xf0]  ;;  %v3419_v10 = vor.u32 %v2861_v3, %v2478_v2 }
  0x5c   : > { %4098 = vst [vmem:[#allocation26_spill] sm:$0xff] %v3417_v9  ;;  %v3421_v11 = vor.u32 %v2825_v5, %v2334_v4  ;;  %v2919_v14 = vld [vmem:[#allocation5 + $0x178] sm:$0xff]  ;;  %v2312_v32 = vld [vmem:[%s3360_s14 + $0xc] sm:$0xf0]  ;;  %v2933_v60 = vld [vmem:[#allocation5 + $0x1e8] sm:$0xff] }
  0x5d   : > { %4099 = vst [vmem:[#allocation27_spill] sm:$0xff] %v3419_v10  ;;  %v2943_v15 = vld [vmem:[#allocation5 + $0x238] sm:$0xff]  ;;  %v2926_v40 = vld [vmem:[#allocation5 + $0x1b0] sm:$0xff] }
  0x5e   : > { %2962 = vmatpush.bf16.msra.mxu1 %v2873_v6  ;;  %2963 = vmatpush.bf16.msra.mxu2 %v2873_v6  ;;  %v2821_v35 = vld [vmem:[%s3360_s14 + $0x1c] sm:$0xf]  ;;  %v2934_v41 = vld [vmem:[#allocation5 + $0x1f0] sm:$0xff]  ;;  %v2366_v5 = vld [vmem:[%s3360_s14 + $0x68] sm:$0xf] }
  0x5f   : > { %2964 = vmatpush.bf16.msra.mxu3 %v2873_v6  ;;  %1223 = vmatpush.bf16.msra.mxu0 %v2873_v6  ;;  %v2880_v6 = vld [vmem:[#allocation5 + $0x40] sm:$0xff]  ;;  %v2327_v39 = vor.u32 %v2821_v35, %v2324_v36  ;;  %v2829_v0 = vld [vmem:[%s3360_s14 + $0x58] sm:$0xf0] }
  0x60   : > { %v2354_v63 = vld [vmem:[%s3360_s14 + $0x50] sm:$0xf]  ;;  %v2384_v35 = vld [vmem:[%s3360_s14 + $0x9c] sm:$0xf0] }
  0x61   : > { %v2360_v2 = vld [vmem:[%s3360_s14 + $0x6c] sm:$0xf0]  ;;  %v3481_v3 = vor.u32 %v2829_v0, %v2354_v63  ;;  %v2923_v63 = vld [vmem:[#allocation5 + $0x198] sm:$0xff] }
  0x62   : > { %2965 = vmatpush.bf16.msra.mxu1 %v2872_v7  ;;  %2966 = vmatpush.bf16.msra.mxu2 %v2872_v7  ;;  %v3483_v4 = vor.u32 %v2830_v1, %v2360_v2  ;;  %v2931_v0 = vld [vmem:[#allocation5 + $0x1d8] sm:$0xff] }
  0x63   : > { %2967 = vmatpush.bf16.msra.mxu3 %v2872_v7  ;;  %1224 = vmatpush.bf16.msra.mxu0 %v2872_v7  ;;  %v2904_v7 = vld [vmem:[#allocation5 + $0x100] sm:$0xff] }
  0x65   : > { %1245 = vmatmul.bf16.vlgmr.msra.gmra.mxu1 %v3378_v18  ;;  %1265 = vmatmul.bf16.vlgmr.msra.gmra.mxu2 %v3380_v19 }
  0x66   : > { %1395 = vmatpush.bf16.msrb.mxu2 %v2895_v16  ;;  %1285 = vmatmul.bf16.vlgmr.msra.gmra.mxu3 %v3382_v20  ;;  %v2394_v16 = vld [vmem:[%s3360_s14 + $0xa8] sm:$0xf] }
  0x67   : > { %1484 = vmatpush.bf16.msrb.mxu3 %v2903_v17  ;;  %1225 = vmatmul.bf16.vlgmr.msra.gmra.mxu0 %v2311_v21  ;;  %v2840_v17 = vld [vmem:[%s3360_s14 + $0xb0] sm:$0xf0]  ;;  %v2442_v21 = vld [vmem:[%s3360_s14 + $0x108] sm:$0xf] }
  0x68   : > { %1306 = vmatpush.bf16.msrb.mxu1 %v2887_v22  ;;  %1573 = vmatpush.bf16.msrb.mxu0 %v2911_v23  ;;  %v2852_v22 = vld [vmem:[%s3360_s14 + $0x110] sm:$0xf0]  ;;  %v2490_v23 = vld [vmem:[%s3360_s14 + $0x168] sm:$0xf] }
  0x6a   : > { %1396 = vmatpush.bf16.msrb.mxu2 %v2894_v24  ;;  %v2864_v24 = vld [vmem:[%s3360_s14 + $0x170] sm:$0xf0] }
  0x6b   : > { %1485 = vmatpush.bf16.msrb.mxu3 %v2902_v25  ;;  %v2346_v25 = vld [vmem:[%s3360_s14 + $0x48] sm:$0xf] }
  0x6c   : > { %1307 = vmatpush.bf16.msrb.mxu1 %v2886_v26  ;;  %1574 = vmatpush.bf16.msrb.mxu0 %v2910_v27  ;;  %v2828_v26 = vld [vmem:[%s3360_s14 + $0x50] sm:$0xf0]  ;;  %v3435_v27 = vor.u32 %v2840_v17, %v2394_v16 }
  0x6d   : > { %v2924_v17 = vld [vmem:[#allocation5 + $0x1a0] sm:$0xff] }
  0x6e   : > { %1397 = vmatpush.bf16.msrb.mxu2 %v2893_v28  ;;  %4100 = vst [vmem:[#allocation28_spill] sm:$0xff] %v3435_v27  ;;  %v3437_v28 = vor.u32 %v2852_v22, %v2442_v21  ;;  %v2932_v21 = vld [vmem:[#allocation5 + $0x1e0] sm:$0xff] }
  0x6f   : > { %1486 = vmatpush.bf16.msrb.mxu3 %v2901_v29  ;;  %v3439_v29 = vor.u32 %v2864_v24, %v2490_v23  ;;  %v2916_v24 = vld [vmem:[#allocation5 + $0x160] sm:$0xff] }
  0x70   : > { %1308 = vmatpush.bf16.msrb.mxu1 %v2885_v30  ;;  %1575 = vmatpush.bf16.msrb.mxu0 %v2909_v31  ;;  %v3441_v30 = vor.u32 %v2828_v26, %v2346_v25  ;;  %v2818_v31 = vld [vmem:[%s3360_s14 + $0x4] sm:$0xf] }
  0x71   : > { %4101 = vst [vmem:[#allocation29_spill] sm:$0xff] %v3439_v29  ;;  %v2315_v37 = vor.u32 %v2818_v31, %v2312_v32  ;;  %v2940_v31 = vld [vmem:[#allocation5 + $0x220] sm:$0xff] }
  0x72   : > { %1398 = vmatpush.bf16.msrb.mxu2 %v2892_v33  ;;  %v2318_v33 = vld [vmem:[%s3360_s14 + $0x8] sm:$0xf]  ;;  %v2378_v32 = vld [vmem:[%s3360_s14 + $0x80] sm:$0xf] }
  0x73   : > { %1487 = vmatpush.bf16.msrb.mxu3 %v2900_v34  ;;  %v2820_v34 = vld [vmem:[%s3360_s14 + $0x10] sm:$0xf0] }
  0x74   : > { %1309 = vmatpush.bf16.msrb.mxu1 %v2884_v42  ;;  %1576 = vmatpush.bf16.msrb.mxu0 %v2908_v43  ;;  %v2319_v38 = vor.u32 %v2820_v34, %v2318_v33  ;;  %v2918_v42 = vld [vmem:[#allocation5 + $0x170] sm:$0xff]  ;;  %v2835_v33 = vld [vmem:[%s3360_s14 + $0x88] sm:$0xf0] }
  0x75   : > { %1250 = vmatmul.bf16.gmra.mxu1 %v3395_v46  ;;  %1270 = vmatmul.bf16.gmra.mxu2 %v3397_v47  ;;  %v2942_v43 = vld [vmem:[#allocation5 + $0x230] sm:$0xff] }
  0x76   : > { %1399 = vmatpush.bf16.msrb.mxu2 %v2891_v44  ;;  %1290 = vmatmul.bf16.gmra.mxu3 %v3399_v48  ;;  %v2330_v44 = vld [vmem:[%s3360_s14 + $0x20] sm:$0xf]  ;;  %v2836_v34 = vld [vmem:[%s3360_s14 + $0x94] sm:$0xf] }
  0x77   : > { %1488 = vmatpush.bf16.msrb.mxu3 %v2899_v45  ;;  %1230 = vmatmul.bf16.gmra.mxu0 %v3401_v49  ;;  %v2823_v45 = vld [vmem:[%s3360_s14 + $0x28] sm:$0xf0] }
  0x78   : > { %1310 = vmatpush.bf16.msrb.mxu1 %v2883_v50  ;;  %1577 = vmatpush.bf16.msrb.mxu0 %v2907_v51  ;;  %v2824_v50 = vld [vmem:[%s3360_s14 + $0x34] sm:$0xf]  ;;  %v2336_v51 = vld [vmem:[%s3360_s14 + $0x3c] sm:$0xf0] }
  0x7a   : > { %1400 = vmatpush.bf16.msrb.mxu2 %v2890_v52  ;;  %v3458_v52 = vor.u32 %v2823_v45, %v2330_v44 }
  0x7b   : > { %1489 = vmatpush.bf16.msrb.mxu3 %v2898_v53  ;;  %v2342_v53 = vld [vmem:[%s3360_s14 + $0x38] sm:$0xf] }
  0x7c   : > { %1311 = vmatpush.bf16.msrb.mxu1 %v2882_v54  ;;  %1578 = vmatpush.bf16.msrb.mxu0 %v2906_v55  ;;  %v2826_v54 = vld [vmem:[%s3360_s14 + $0x40] sm:$0xf0]  ;;  %v2827_v55 = vld [vmem:[%s3360_s14 + $0x4c] sm:$0xf] }
  0x7e   : > { %1401 = vmatpush.bf16.msrb.mxu2 %v2889_v56  ;;  %v2348_v56 = vld [vmem:[%s3360_s14 + $0x54] sm:$0xf0] }
  0x7f   : > { %1490 = vmatpush.bf16.msrb.mxu3 %v2897_v57  ;;  %v3469_v57 = vor.u32 %v2826_v54, %v2342_v53  ;;  %v2839_v53 = vld [vmem:[%s3360_s14 + $0xac] sm:$0xf]  ;;  %v2396_v54 = vld [vmem:[%s3360_s14 + $0xb4] sm:$0xf0] }
  0x80   : > { %1312 = vmatpush.bf16.msrb.mxu1 %v2881_v58  ;;  %1579 = vmatpush.bf16.msrb.mxu0 %v2905_v59  ;;  %v3471_v58 = vor.u32 %v2827_v55, %v2348_v56  ;;  %v2925_v59 = vld [vmem:[#allocation5 + $0x1a8] sm:$0xff] }
  0x82   : > { %1402 = vmatpush.bf16.msrb.mxu2 %v2888_v61  ;;  %v2917_v61 = vld [vmem:[#allocation5 + $0x168] sm:$0xff] }
  0x83   : > { %1491 = vmatpush.bf16.msrb.mxu3 %v2896_v62  ;;  %v2941_v62 = vld [vmem:[#allocation5 + $0x228] sm:$0xff] }
  0x84   : > { %1313 = vmatpush.bf16.msrb.mxu1 %v2880_v6  ;;  %1580 = vmatpush.bf16.msrb.mxu0 %v2904_v7  ;;  %v2832_v6 = vld [vmem:[%s3360_s14 + $0x70] sm:$0xf0]  ;;  %v2833_v7 = vld [vmem:[%s3360_s14 + $0x7c] sm:$0xf] }
  0x85   : > { %1255 = vmatmul.bf16.gmra.mxu1 %v3415_v8  ;;  %1275 = vmatmul.bf16.gmra.mxu2 %v3417_v9 }
  0x86   : > { %1295 = vmatmul.bf16.gmra.mxu3 %v3419_v10  ;;  %1751 = vmatpush.bf16.msra.mxu2 %v2927_v12  ;;  %v2372_v12 = vld [vmem:[%s3360_s14 + $0x84] sm:$0xf0] }
  0x87   : > { %1235 = vmatmul.bf16.gmra.mxu0 %v3421_v11  ;;  %1840 = vmatpush.bf16.msra.mxu3 %v2935_v13  ;;  %v3493_v13 = vor.u32 %v2832_v6, %v2366_v5 }
  0x88   : > { %1662 = vmatpush.bf16.msra.mxu1 %v2919_v14  ;;  %1929 = vmatpush.bf16.msra.mxu0 %v2943_v15  ;;  %v3497_v15 = vor.u32 %v2833_v7, %v2372_v12  ;;  %v2915_v7 = vld [vmem:[#allocation5 + $0x158] sm:$0xff] }
  0x89   : > { %v2939_v12 = vld [vmem:[#allocation5 + $0x218] sm:$0xff] }
  0x8a   : > { %1752 = vmatpush.bf16.msra.mxu2 %v2926_v40  ;;  %v3525_v40 = vor.u32 %v2836_v34, %v2384_v35 }
  0x8b   : > { %1841 = vmatpush.bf16.msra.mxu3 %v2934_v41 }
  0x8c   : > { %1663 = vmatpush.bf16.msra.mxu1 %v2918_v42  ;;  %1930 = vmatpush.bf16.msra.mxu0 %v2942_v43 }
  0x8e   : > { %1753 = vmatpush.bf16.msra.mxu2 %v2925_v59 }
  0x8f   : > { %1842 = vmatpush.bf16.msra.mxu3 %v2933_v60 }
  0x90   : > { %1664 = vmatpush.bf16.msra.mxu1 %v2917_v61  ;;  %1931 = vmatpush.bf16.msra.mxu0 %v2941_v62  ;;  %v3553_v61 = vor.u32 %v2839_v53, %v2396_v54 }
  0x92   : > { %1754 = vmatpush.bf16.msra.mxu2 %v2924_v17  ;;  %4107 = vst [vmem:[#allocation35_spill] sm:$0xff] %v3553_v61  ;;  %v2402_v17 = vld [vmem:[%s3360_s14 + $0xb0] sm:$0xf] }
  0x93   : > { %1843 = vmatpush.bf16.msra.mxu3 %v2932_v21  ;;  %v2841_v21 = vld [vmem:[%s3360_s14 + $0xb8] sm:$0xf0] }
  0x94   : > { %1665 = vmatpush.bf16.msra.mxu1 %v2916_v24  ;;  %1932 = vmatpush.bf16.msra.mxu0 %v2940_v31  ;;  %v2842_v24 = vld [vmem:[%s3360_s14 + $0xc4] sm:$0xf]  ;;  %v2408_v31 = vld [vmem:[%s3360_s14 + $0xcc] sm:$0xf0]  ;;  %v3577_v34 = vor.u32 %v2841_v21, %v2402_v17  ;;  %v2845_v17 = vld [vmem:[%s3360_s14 + $0xdc] sm:$0xf] }
  0x95   : > { %1260 = vmatmul.bf16.gmra.mxu1 %v3435_v27  ;;  %1280 = vmatmul.bf16.gmra.mxu2 %v3437_v28  ;;  %v2420_v21 = vld [vmem:[%s3360_s14 + $0xe4] sm:$0xf0] }
  0x96   : > { %1300 = vmatmul.bf16.gmra.mxu3 %v3439_v29  ;;  %1755 = vmatpush.bf16.msra.mxu2 %v2923_v63  ;;  %4110 = vst [vmem:[#allocation38_spill] sm:$0xff] %v3577_v34 }
  0x97   : > { %1240 = vmatmul.bf16.gmra.mxu0 %v3441_v30  ;;  %1844 = vmatpush.bf16.msra.mxu3 %v2931_v0 }
  0x98   : > { %1666 = vmatpush.bf16.msra.mxu1 %v2915_v7  ;;  %1933 = vmatpush.bf16.msra.mxu0 %v2939_v12  ;;  %v2414_v7 = vld [vmem:[%s3360_s14 + $0xc8] sm:$0xf]  ;;  %v2844_v12 = vld [vmem:[%s3360_s14 + $0xd0] sm:$0xf0] }
  0xa5   : > { %1314 = vmatmul.bf16.vlgmr.msrb.gmra.mxu1 %v2315_v37  ;;  %1403 = vmatmul.bf16.vlgmr.msrb.gmra.mxu2 %v2319_v38  ;;  %v3521_v38 = vor.u32 %v2835_v33, %v2378_v32 }
  0xa6   : > { %1492 = vmatmul.bf16.vlgmr.msrb.gmra.mxu3 %v3401_v49  ;;  %v3460_v49 = vor.u32 %v2824_v50, %v2336_v51  ;;  %v2390_v50 = vld [vmem:[%s3360_s14 + $0x98] sm:$0xf]  ;;  %v2838_v51 = vld [vmem:[%s3360_s14 + $0xa0] sm:$0xf0] }
  0xa7   : > { %1581 = vmatmul.bf16.vlgmr.msrb.gmra.mxu0 %v2327_v39  ;;  %v3549_v59 = vor.u32 %v2838_v51, %v2390_v50  ;;  %v3581_v50 = vor.u32 %v2842_v24, %v2408_v31 }
  0xa9   : > { %4106 = vst [vmem:[#allocation34_spill] sm:$0xff] %v3549_v59 }
  0xaa   : > { %4111 = vst [vmem:[#allocation39_spill] sm:$0xff] %v3581_v50 }
  0xb5   : > { %1319 = vmatmul.bf16.gmra.mxu1 %v2327_v39  ;;  %1408 = vmatmul.bf16.gmra.mxu2 %v3458_v52 }
  0xb6   : > { %1497 = vmatmul.bf16.gmra.mxu3 %v3421_v11 }
  0xb7   : > { %1586 = vmatmul.bf16.gmra.mxu0 %v3460_v49 }
  0xc5   : > { %1324 = vmatmul.bf16.gmra.mxu1 %v3460_v49  ;;  %1413 = vmatmul.bf16.gmra.mxu2 %v3469_v57 }
  0xc6   : > { %1502 = vmatmul.bf16.gmra.mxu3 %v3441_v30 }
  0xc7   : > { %1591 = vmatmul.bf16.gmra.mxu0 %v3471_v58 }
  0xd5   : > { %1329 = vmatmul.bf16.gmra.mxu1 %v3471_v58  ;;  %1418 = vmatmul.bf16.gmra.mxu2 %v3481_v3 }
  0xd6   : > { %1507 = vmatmul.bf16.gmra.mxu3 %v3378_v18 }
  0xd7   : > { %1596 = vmatmul.bf16.gmra.mxu0 %v3483_v4 }
  0xe2   : > { %v3495_v14 = vpop.f32.mrf.mxu1 }
  0xe4   : > { %v3499_v16 = vpop.f32.mrf.mxu0 }
  0xe5   : > { %1334 = vmatmul.bf16.gmra.mxu1 %v3483_v4  ;;  %1423 = vmatmul.bf16.gmra.mxu2 %v3493_v13 }
  0xe6   : > { %1512 = vmatmul.bf16.gmra.mxu3 %v3395_v46 }
  0xe7   : > { %1601 = vmatmul.bf16.gmra.mxu0 %v3497_v15 }
  0xe8   : > { %v3505_v22 = vpop.f32.mrf.mxu2 }
  0xe9   : > { %v3507_v23 = vpop.f32.mrf.mxu3 }
  0xea   : > { %4102 = vst [vmem:[#allocation30_spill] sm:$0xff] %v3507_v23  ;;  %v3509_v25 = vpop.f32.mrf.mxu1  ;;  %v2432_v23 = vld [vmem:[%s3360_s14 + $0xfc] sm:$0xf0] }
  0xec   : > { %v3511_v26 = vpop.f32.mrf.mxu0 }
  0xf0   : > { %v3517_v36 = vpop.f32.mrf.mxu2 }
  0xf1   : > { %v3519_v37 = vpop.f32.mrf.mxu3 }
  0xf2   : > { %4103 = vst [vmem:[#allocation31_spill] sm:$0xff] %v3519_v37  ;;  %v3523_v39 = vpop.f32.mrf.mxu1  ;;  %v2848_v37 = vld [vmem:[%s3360_s14 + $0xf4] sm:$0xf] }
  0xf4   : > { %v3527_v41 = vpop.f32.mrf.mxu0 }
  0xf5   : > { %1339 = vmatmul.bf16.gmra.mxu1 %v3497_v15  ;;  %1428 = vmatmul.bf16.gmra.mxu2 %v3521_v38 }
  0xf6   : > { %1517 = vmatmul.bf16.gmra.mxu3 %v3415_v8 }
  0xf7   : > { %1606 = vmatmul.bf16.gmra.mxu0 %v3525_v40 }
  0xf8   : > { %v3533_v42 = vpop.f32.mrf.mxu2 }
  0xf9   : > { %v3535_v43 = vpop.f32.mrf.mxu3 }
  0xfa   : > { %4104 = vst [vmem:[#allocation32_spill] sm:$0xff] %v3535_v43  ;;  %v3537_v44 = vpop.f32.mrf.mxu1  ;;  %v2922_v43 = vld [vmem:[#allocation5 + $0x190] sm:$0xff] }
  0xfb   : > { %1756 = vmatpush.bf16.msra.mxu2 %v2922_v43 }
  0xfc   : > { %v3539_v45 = vpop.f32.mrf.mxu0 }
 0x100   : > { %v3545_v55 = vpop.f32.mrf.mxu2 }
 0x101   : > { %v3547_v56 = vpop.f32.mrf.mxu3 }
 0x102   : > { %4105 = vst [vmem:[#allocation33_spill] sm:$0xff] %v3547_v56  ;;  %v3551_v60 = vpop.f32.mrf.mxu1 }
 0x104   : > { %v3555_v62 = vpop.f32.mrf.mxu0 }
 0x105   : > { %1344 = vmatmul.bf16.gmra.mxu1 %v3525_v40  ;;  %1433 = vmatmul.bf16.gmra.mxu2 %v3549_v59 }
 0x106   : > { %1522 = vmatmul.bf16.gmra.mxu3 %v3435_v27  ;;  %v2847_v27 = vld [vmem:[%s3360_s14 + $0xe8] sm:$0xf0] }
 0x107   : > { %1611 = vmatmul.bf16.gmra.mxu0 %v3553_v61 }
 0x108   : > { %v3561_v1 = vpop.f32.mrf.mxu2 }
 0x109   : > { %v3563_v2 = vpop.f32.mrf.mxu3 }
 0x10a   : > { %4108 = vst [vmem:[#allocation36_spill] sm:$0xff] %v3563_v2  ;;  %v3565_v5 = vpop.f32.mrf.mxu1 }
 0x10c   : > { %v3567_v6 = vpop.f32.mrf.mxu0 }
 0x110   : > { %v3573_v32 = vpop.f32.mrf.mxu2 }
 0x111   : > { %v3575_v33 = vpop.f32.mrf.mxu3 }
 0x112   : > { %4109 = vst [vmem:[#allocation37_spill] sm:$0xff] %v3575_v33  ;;  %v3579_v35 = vpop.f32.mrf.mxu1  ;;  %v3605_v33 = vor.u32 %v2844_v12, %v2414_v7 }
 0x114   : > { %v3583_v51 = vpop.f32.mrf.mxu0  ;;  %4114 = vst [vmem:[#allocation42_spill] sm:$0xff] %v3605_v33 }
 0x115   : > { %1349 = vmatmul.bf16.gmra.mxu1 %v3553_v61  ;;  %1438 = vmatmul.bf16.gmra.mxu2 %v3577_v34  ;;  %v2930_v34 = vld [vmem:[#allocation5 + $0x1d0] sm:$0xff] }
 0x116   : > { %1527 = vmatmul.bf16.gmra.mxu3 %v3380_v19  ;;  %v3607_v19 = vor.u32 %v2845_v17, %v2420_v21  ;;  %v2426_v61 = vld [vmem:[%s3360_s14 + $0xe0] sm:$0xf] }
 0x117   : > { %1616 = vmatmul.bf16.gmra.mxu0 %v3581_v50  ;;  %1845 = vmatpush.bf16.msra.mxu3 %v2930_v34 }
 0x118   : > { %v3589_v53 = vpop.f32.mrf.mxu2 }
 0x119   : > { %v3591_v54 = vpop.f32.mrf.mxu3 }
 0x11a   : > { %4112 = vst [vmem:[#allocation40_spill] sm:$0xff] %v3591_v54  ;;  %v3593_v63 = vpop.f32.mrf.mxu1 }
 0x11c   : > { %v3595_v0 = vpop.f32.mrf.mxu0 }
 0x120   : > { %v3601_v24 = vpop.f32.mrf.mxu2 }
 0x121   : > { %v3603_v31 = vpop.f32.mrf.mxu3 }
 0x122   : > { %4113 = vst [vmem:[#allocation41_spill] sm:$0xff] %v3603_v31  ;;  %v1315_v2 = vpop.f32.mrf.mxu1 }
 0x123   : > { %v1316_v56 = vadd.f32 %v1315_v2, %v3499_v16 }
 0x124   : > { %v1582_v54 = vpop.f32.mrf.mxu0 }
 0x125   : > { %1354 = vmatmul.bf16.gmra.mxu1 %v3581_v50  ;;  %1443 = vmatmul.bf16.gmra.mxu2 %v3605_v33  ;;  %v2914_v33 = vld [vmem:[#allocation5 + $0x150] sm:$0xff] }
 0x126   : > { %1532 = vmatmul.bf16.gmra.mxu3 %v3397_v47  ;;  %v2938_v47 = vld [vmem:[#allocation5 + $0x210] sm:$0xff]  ;;  %1667 = vmatpush.bf16.msra.mxu1 %v2914_v33 }
 0x127   : > { %1621 = vmatmul.bf16.gmra.mxu0 %v3607_v19 }
 0x128   : > { %v1404_v7 = vpop.f32.mrf.mxu2  ;;  %1934 = vmatpush.bf16.msra.mxu0 %v2938_v47 }
 0x129   : > { %v1405_v12 = vadd.f32 %v1404_v7, %v1316_v56  ;;  %v1493_v16 = vpop.f32.mrf.mxu3  ;;  %v3621_v56 = vor.u32 %v2847_v27, %v2426_v61 }
 0x12a   : > { %v1317_v2 = vpop.f32.mrf.mxu1 }
 0x12b   : > { %v1494_v17 = vadd.f32 %v1493_v16, %v1405_v12  ;;  %v1318_v21 = vadd.f32 %v1317_v2, %v3511_v26  ;;  %v3623_v12 = vor.u32 %v2848_v37, %v2432_v23 }
 0x12c   : > { %v1584_v31 = vpop.f32.mrf.mxu0 }
 0x12d   : > { %v3615_v50 = vadd.f32 %v1582_v54, %v1494_v17  ;;  %v2438_v17 = vld [vmem:[%s3360_s14 + $0xf8] sm:$0xf] }
 0x12f   : > { %4115 = vst [vmem:[#allocation43_spill] sm:$0xff] %v3615_v50 }
 0x130   : > { %v1406_v43 = vpop.f32.mrf.mxu2 }
 0x131   : > { %v1407_v59 = vadd.f32 %v1406_v43, %v1318_v21  ;;  %v1495_v34 = vpop.f32.mrf.mxu3  ;;  %v2850_v21 = vld [vmem:[%s3360_s14 + $0x100] sm:$0xf0]  ;;  %v2851_v43 = vld [vmem:[%s3360_s14 + $0x10c] sm:$0xf] }
 0x132   : > { %v1320_v7 = vpop.f32.mrf.mxu1 }
 0x133   : > { %v1496_v26 = vadd.f32 %v1495_v34, %v1407_v59  ;;  %v1321_v16 = vadd.f32 %v1320_v7, %v3527_v41  ;;  %v2444_v34 = vld [vmem:[%s3360_s14 + $0x114] sm:$0xf0] }
 0x134   : > { %v1587_v47 = vpop.f32.mrf.mxu0 }
 0x135   : > { %1359 = vmatmul.bf16.gmra.mxu1 %v3607_v19  ;;  %1448 = vmatmul.bf16.gmra.mxu2 %v3621_v56  ;;  %v3628_v33 = vadd.f32 %v1584_v31, %v1496_v26 }
 0x136   : > { %1537 = vmatmul.bf16.gmra.mxu3 %v3417_v9  ;;  %v3641_v9 = vor.u32 %v2851_v43, %v2444_v34  ;;  %v2937_v43 = vld [vmem:[#allocation5 + $0x208] sm:$0xff] }
 0x137   : > { %4116 = vst [vmem:[#allocation44_spill] sm:$0xff] %v3628_v33  ;;  %1626 = vmatmul.bf16.gmra.mxu0 %v3623_v12  ;;  %v3639_v33 = vor.u32 %v2850_v21, %v2438_v17  ;;  %v2913_v21 = vld [vmem:[#allocation5 + $0x148] sm:$0xff] }
 0x138   : > { %v1409_v27 = vpop.f32.mrf.mxu2  ;;  %1668 = vmatpush.bf16.msra.mxu1 %v2913_v21  ;;  %1935 = vmatpush.bf16.msra.mxu0 %v2937_v43 }
 0x139   : > { %v1410_v23 = vadd.f32 %v1409_v27, %v1321_v16  ;;  %v1498_v37 = vpop.f32.mrf.mxu3 }
 0x13a   : > { %v1322_v59 = vpop.f32.mrf.mxu1 }
 0x13b   : > { %v1499_v61 = vadd.f32 %v1498_v37, %v1410_v23  ;;  %v1323_v41 = vadd.f32 %v1322_v59, %v3539_v45  ;;  %v2929_v37 = vld [vmem:[#allocation5 + $0x1c8] sm:$0xff] }
 0x13c   : > { %v1589_v54 = vpop.f32.mrf.mxu0  ;;  %1846 = vmatpush.bf16.msra.mxu3 %v2929_v37 }
 0x13d   : > { %v3633_v2 = vadd.f32 %v1587_v47, %v1499_v61  ;;  %v2921_v47 = vld [vmem:[#allocation5 + $0x188] sm:$0xff] }
 0x13e   : > { %1757 = vmatpush.bf16.msra.mxu2 %v2921_v47 }
 0x140   : > { %v1411_v31 = vpop.f32.mrf.mxu2 }
 0x141   : > { %v1412_v7 = vadd.f32 %v1411_v31, %v1323_v41  ;;  %v1500_v26 = vpop.f32.mrf.mxu3  ;;  %v2450_v31 = vld [vmem:[%s3360_s14 + $0x110] sm:$0xf] }
 0x142   : > { %v1325_v50 = vpop.f32.mrf.mxu1 }
 0x143   : > { %v1501_v16 = vadd.f32 %v1500_v26, %v1412_v7  ;;  %v1326_v27 = vadd.f32 %v1325_v50, %v3555_v62  ;;  %v2853_v7 = vld [vmem:[%s3360_s14 + $0x118] sm:$0xf0]  ;;  %v2854_v26 = vld [vmem:[%s3360_s14 + $0x124] sm:$0xf] }
 0x144   : > { %v1592_v23 = vpop.f32.mrf.mxu0 }
 0x145   : > { %1364 = vmatmul.bf16.gmra.mxu1 %v3623_v12  ;;  %1453 = vmatmul.bf16.gmra.mxu2 %v3639_v33  ;;  %v3646_v45 = vadd.f32 %v1589_v54, %v1501_v16  ;;  %v2456_v16 = vld [vmem:[%s3360_s14 + $0x12c] sm:$0xf0] }
 0x146   : > { %1542 = vmatmul.bf16.gmra.mxu3 %v3437_v28 }
 0x147   : > { %4117 = vst [vmem:[#allocation45_spill] sm:$0xff] %v3646_v45  ;;  %1631 = vmatmul.bf16.gmra.mxu0 %v3641_v9 }
 0x148   : > { %v1414_v59 = vpop.f32.mrf.mxu2 }
 0x149   : > { %v1415_v62 = vadd.f32 %v1414_v59, %v1326_v27  ;;  %v1503_v50 = vpop.f32.mrf.mxu3  ;;  %v3657_v27 = vor.u32 %v2853_v7, %v2450_v31 }
 0x14a   : > { %v1327_v61 = vpop.f32.mrf.mxu1 }
 0x14b   : > { %v1504_v41 = vadd.f32 %v1503_v50, %v1415_v62  ;;  %v1328_v54 = vadd.f32 %v1327_v61, %v3567_v6  ;;  %v3659_v62 = vor.u32 %v2854_v26, %v2456_v16  ;;  %v2462_v26 = vld [vmem:[%s3360_s14 + $0x128] sm:$0xf]  ;;  %v2856_v16 = vld [vmem:[%s3360_s14 + $0x130] sm:$0xf0] }
 0x14c   : > { %v1594_v17 = vpop.f32.mrf.mxu0 }
 0x14d   : > { %v3651_v34 = vadd.f32 %v1592_v23, %v1504_v41 }
 0x14f   : > { %4118 = vst [vmem:[#allocation46_spill] sm:$0xff] %v3651_v34 }
 0x150   : > { %v1416_v47 = vpop.f32.mrf.mxu2 }
 0x151   : > { %v1417_v45 = vadd.f32 %v1416_v47, %v1328_v54  ;;  %v1505_v37 = vpop.f32.mrf.mxu3  ;;  %v2857_v47 = vld [vmem:[%s3360_s14 + $0x13c] sm:$0xf] }
 0x152   : > { %v1330_v59 = vpop.f32.mrf.mxu1 }
 0x153   : > { %v1506_v6 = vadd.f32 %v1505_v37, %v1417_v45  ;;  %v1331_v50 = vadd.f32 %v1330_v59, %v3583_v51  ;;  %v2468_v37 = vld [vmem:[%s3360_s14 + $0x144] sm:$0xf0] }
 0x154   : > { %v1597_v61 = vpop.f32.mrf.mxu0 }
 0x155   : > { %1369 = vmatmul.bf16.gmra.mxu1 %v3641_v9  ;;  %1458 = vmatmul.bf16.gmra.mxu2 %v3657_v27  ;;  %v3664_v23 = vadd.f32 %v1594_v17, %v1506_v6 }
 0x156   : > { %1547 = vmatmul.bf16.gmra.mxu3 %v3382_v20  ;;  %v3677_v20 = vor.u32 %v2857_v47, %v2468_v37  ;;  %v2912_v47 = vld [vmem:[#allocation5 + $0x140] sm:$0xff] }
 0x157   : > { %4119 = vst [vmem:[#allocation47_spill] sm:$0xff] %v3664_v23  ;;  %1636 = vmatmul.bf16.gmra.mxu0 %v3659_v62  ;;  %v3675_v23 = vor.u32 %v2856_v16, %v2462_v26  ;;  %v2936_v37 = vld [vmem:[#allocation5 + $0x200] sm:$0xff]  ;;  %1669 = vmatpush.bf16.msra.mxu1 %v2912_v47 }
 0x158   : > { %v1419_v41 = vpop.f32.mrf.mxu2  ;;  %1936 = vmatpush.bf16.msra.mxu0 %v2936_v37 }
 0x159   : > { %v1420_v54 = vadd.f32 %v1419_v41, %v1331_v50  ;;  %v1508_v45 = vpop.f32.mrf.mxu3 }
 0x15a   : > { %v1332_v21 = vpop.f32.mrf.mxu1 }
 0x15b   : > { %v1509_v43 = vadd.f32 %v1508_v45, %v1420_v54  ;;  %v1333_v51 = vadd.f32 %v1332_v21, %v3595_v0  ;;  %v2928_v54 = vld [vmem:[#allocation5 + $0x1c0] sm:$0xff] }
 0x15c   : > { %v1599_v31 = vpop.f32.mrf.mxu0  ;;  %1847 = vmatpush.bf16.msra.mxu3 %v2928_v54 }
 0x15d   : > { %v3669_v7 = vadd.f32 %v1597_v61, %v1509_v43  ;;  %v2920_v61 = vld [vmem:[#allocation5 + $0x180] sm:$0xff] }
 0x15e   : > { %1758 = vmatpush.bf16.msra.mxu2 %v2920_v61 }
 0x160   : > { %v1421_v17 = vpop.f32.mrf.mxu2 }
 0x161   : > { %v1422_v59 = vadd.f32 %v1421_v17, %v1333_v51  ;;  %v1510_v6 = vpop.f32.mrf.mxu3 }
 0x162   : > { %v1335_v34 = vpop.f32.mrf.mxu1 }
 0x163   : > { %v1511_v50 = vadd.f32 %v1510_v6, %v1422_v59  ;;  %v1336_v45 = vadd.f32 %v1335_v34, %v3495_v14  ;;  %v2474_v59 = vld [vmem:[%s3360_s14 + $0x140] sm:$0xf]  ;;  %v2859_v6 = vld [vmem:[%s3360_s14 + $0x148] sm:$0xf0]  ;;  %v2860_v34 = vld [vmem:[%s3360_s14 + $0x154] sm:$0xf] }
 0x164   : > { %v1602_v41 = vpop.f32.mrf.mxu0 }
 0x165   : > { %1374 = vmatmul.bf16.gmra.mxu1 %v3659_v62  ;;  %1463 = vmatmul.bf16.gmra.mxu2 %v3675_v23  ;;  %v3681_v0 = vadd.f32 %v1599_v31, %v1511_v50  ;;  %v2480_v50 = vld [vmem:[%s3360_s14 + $0x15c] sm:$0xf0] }
 0x166   : > { %1552 = vmatmul.bf16.gmra.mxu3 %v3399_v48 }
 0x167   : > { %4120 = vst [vmem:[#allocation48_spill] sm:$0xff] %v3681_v0  ;;  %1641 = vmatmul.bf16.gmra.mxu0 %v3677_v20 }
 0x168   : > { %v1424_v21 = vpop.f32.mrf.mxu2 }
 0x169   : > { %v1425_v43 = vadd.f32 %v1424_v21, %v1336_v45  ;;  %v1513_v51 = vpop.f32.mrf.mxu3  ;;  %v3693_v45 = vor.u32 %v2859_v6, %v2474_v59 }
 0x16a   : > { %v1337_v26 = vpop.f32.mrf.mxu1 }
 0x16b   : > { %v1514_v31 = vadd.f32 %v1513_v51, %v1425_v43  ;;  %v1338_v14 = vadd.f32 %v1337_v26, %v3509_v25  ;;  %v3695_v43 = vor.u32 %v2860_v34, %v2480_v50  ;;  %v2486_v34 = vld [vmem:[%s3360_s14 + $0x158] sm:$0xf]  ;;  %v2862_v50 = vld [vmem:[%s3360_s14 + $0x160] sm:$0xf0] }
 0x16c   : > { %v1604_v16 = vpop.f32.mrf.mxu0 }
 0x16d   : > { %v3686_v17 = vadd.f32 %v1602_v41, %v1514_v31 }
 0x16f   : > { %4121 = vst [vmem:[#allocation49_spill] sm:$0xff] %v3686_v17 }
 0x170   : > { %v1426_v61 = vpop.f32.mrf.mxu2 }
 0x171   : > { %v1427_v0 = vadd.f32 %v1426_v61, %v1338_v14  ;;  %v1515_v54 = vpop.f32.mrf.mxu3 }
 0x172   : > { %v1340_v21 = vpop.f32.mrf.mxu1 }
 0x173   : > { %v1516_v51 = vadd.f32 %v1515_v54, %v1427_v0  ;;  %v1341_v41 = vadd.f32 %v1340_v21, %v3523_v39  ;;  %v2492_v54 = vld [vmem:[%s3360_s14 + $0x174] sm:$0xf0] }
 0x174   : > { %v1607_v47 = vpop.f32.mrf.mxu0 }
 0x175   : > { %1379 = vmatmul.bf16.gmra.mxu1 %v3677_v20  ;;  %1468 = vmatmul.bf16.gmra.mxu2 %v3693_v45  ;;  %v3699_v25 = vadd.f32 %v1604_v16, %v1516_v51  ;;  %v2863_v16 = vld [vmem:[%s3360_s14 + $0x16c] sm:$0xf] }
 0x176   : > { %1557 = vmatmul.bf16.gmra.mxu3 %v3419_v10  ;;  %v3711_v10 = vor.u32 %v2862_v50, %v2486_v34  ;;  %v3713_v21 = vor.u32 %v2863_v16, %v2492_v54  ;;  %v2498_v50 = vld [vmem:[%s3360_s14 + $0x170] sm:$0xf]  ;;  %v2867_v54 = vld [vmem:[%s3360_s14 + $0x188] sm:$0xf0] }
 0x177   : > { %4122 = vst [vmem:[#allocation50_spill] sm:$0xff] %v3699_v25  ;;  %1646 = vmatmul.bf16.gmra.mxu0 %v3695_v43 }
 0x178   : > { %v1429_v26 = vpop.f32.mrf.mxu2 }
 0x179   : > { %v1430_v31 = vadd.f32 %v1429_v26, %v1341_v41  ;;  %v1518_v37 = vpop.f32.mrf.mxu3 }
 0x17a   : > { %v1342_v0 = vpop.f32.mrf.mxu1 }
 0x17b   : > { %v1519_v59 = vadd.f32 %v1518_v37, %v1430_v31  ;;  %v1343_v61 = vadd.f32 %v1342_v0, %v3537_v44 }
 0x17c   : > { %v1609_v6 = vpop.f32.mrf.mxu0 }
 0x17d   : > { %v3704_v14 = vadd.f32 %v1607_v47, %v1519_v59 }
 0x17f   : > { %4123 = vst [vmem:[#allocation51_spill] sm:$0xff] %v3704_v14 }
 0x180   : > { %v1431_v51 = vpop.f32.mrf.mxu2 }
 0x181   : > { %v1432_v25 = vadd.f32 %v1431_v51, %v1343_v61  ;;  %v1520_v17 = vpop.f32.mrf.mxu3  ;;  %v2865_v61 = vld [vmem:[%s3360_s14 + $0x178] sm:$0xf0]  ;;  %v2866_v51 = vld [vmem:[%s3360_s14 + $0x184] sm:$0xf] }
 0x182   : > { %v1345_v39 = vpop.f32.mrf.mxu1 }
 0x183   : > { %v1521_v41 = vadd.f32 %v1520_v17, %v1432_v25  ;;  %v1346_v47 = vadd.f32 %v1345_v39, %v3551_v60  ;;  %v3731_v60 = vor.u32 %v2865_v61, %v2498_v50 }
 0x184   : > { %v1612_v26 = vpop.f32.mrf.mxu0 }
 0x185   : > { %1384 = vmatmul.bf16.gmra.mxu1 %v3695_v43  ;;  %1473 = vmatmul.bf16.gmra.mxu2 %v3711_v10  ;;  %v3717_v44 = vadd.f32 %v1609_v6, %v1521_v41  ;;  %v2502_v6 = vld [vmem:[%s3360_s14 + $0x180] sm:$0xf]  ;;  %v2504_v41 = vld [vmem:[%s3360_s14 + $0x18c] sm:$0xf0] }
 0x186   : > { %1562 = vmatmul.bf16.gmra.mxu3 %v3439_v29 }
 0x187   : > { %4124 = vst [vmem:[#allocation52_spill] sm:$0xff] %v3717_v44  ;;  %1651 = vmatmul.bf16.gmra.mxu0 %v3713_v21 }
 0x188   : > { %v1434_v31 = vpop.f32.mrf.mxu2 }
 0x189   : > { %v1435_v17 = vadd.f32 %v1434_v31, %v1346_v47  ;;  %v1523_v25 = vpop.f32.mrf.mxu3  ;;  %v3733_v47 = vor.u32 %v2867_v54, %v2502_v6  ;;  %v3735_v31 = vor.u32 %v2866_v51, %v2504_v41 }
 0x18a   : > { %v1347_v37 = vpop.f32.mrf.mxu1 }
 0x18b   : > { %v1524_v0 = vadd.f32 %v1523_v25, %v1435_v17  ;;  %v1348_v16 = vadd.f32 %v1347_v37, %v3565_v5 }
 0x18c   : > { %v1614_v59 = vpop.f32.mrf.mxu0 }
 0x18d   : > { %v3722_v34 = vadd.f32 %v1612_v26, %v1524_v0 }
 0x190   : > { %v1436_v44 = vpop.f32.mrf.mxu2 }
 0x191   : > { %v1437_v14 = vadd.f32 %v1436_v44, %v1348_v16  ;;  %v1525_v29 = vpop.f32.mrf.mxu3 }
 0x192   : > { %v1350_v39 = vpop.f32.mrf.mxu1 }
 0x193   : > { %v1526_v26 = vadd.f32 %v1525_v29, %v1437_v14  ;;  %v1351_v44 = vadd.f32 %v1350_v39, %v3579_v35 }
 0x194   : > { %v1617_v17 = vpop.f32.mrf.mxu0 }
 0x195   : > { %1389 = vmatmul.bf16.gmra.mxu1 %v3713_v21  ;;  %1478 = vmatmul.bf16.gmra.mxu2 %v3731_v60  ;;  %v3739_v5 = vadd.f32 %v1614_v59, %v1526_v26 }
 0x196   : > { %1567 = vmatmul.bf16.gmra.mxu3 %v3733_v47 }
 0x197   : > { %1656 = vmatmul.bf16.gmra.mxu0 %v3735_v31 }
 0x198   : > { %v1439_v25 = vpop.f32.mrf.mxu2 }
 0x199   : > { %v1440_v37 = vadd.f32 %v1439_v25, %v1351_v44  ;;  %v1528_v0 = vpop.f32.mrf.mxu3 }
 0x19a   : > { %v1352_v50 = vpop.f32.mrf.mxu1 }
 0x19b   : > { %v1529_v61 = vadd.f32 %v1528_v0, %v1440_v37  ;;  %v1353_v14 = vadd.f32 %v1352_v50, %v3593_v63 }
 0x19c   : > { %v1619_v6 = vpop.f32.mrf.mxu0 }
 0x19d   : > { %v3744_v29 = vadd.f32 %v1617_v17, %v1529_v61 }
 0x1a0   : > { %v1441_v16 = vpop.f32.mrf.mxu2 }
 0x1a1   : > { %v1442_v54 = vadd.f32 %v1441_v16, %v1353_v14  ;;  %v1530_v59 = vpop.f32.mrf.mxu3 }
 0x1a2   : > { %v1355_v51 = vpop.f32.mrf.mxu1 }
 0x1a3   : > { %v1531_v41 = vadd.f32 %v1530_v59, %v1442_v54  ;;  %v1356_v39 = vadd.f32 %v1355_v51, %v3505_v22 }
 0x1a4   : > { %v1622_v26 = vpop.f32.mrf.mxu0 }
 0x1a5   : > { %1670 = vmatmul.bf16.vlgmr.msra.gmra.mxu1 %v3458_v52  ;;  %1759 = vmatmul.bf16.vlgmr.msra.gmra.mxu2 %v3421_v11  ;;  %v3749_v35 = vadd.f32 %v1619_v6, %v1531_v41 }
 0x1a6   : > { %1848 = vmatmul.bf16.vlgmr.msra.gmra.mxu3 %v3460_v49 }
 0x1a7   : > { %1937 = vmatmul.bf16.vlgmr.msra.gmra.mxu0 %v3469_v57 }
 0x1a8   : > { %v1444_v17 = vpop.f32.mrf.mxu2 }
 0x1a9   : > { %v1445_v63 = vadd.f32 %v1444_v17, %v1356_v39  ;;  %v1533_v44 = vpop.f32.mrf.mxu3 }
 0x1aa   : > { %v1357_v25 = vpop.f32.mrf.mxu1 }
 0x1ab   : > { %v1534_v37 = vadd.f32 %v1533_v44, %v1445_v63  ;;  %v1358_v52 = vadd.f32 %v1357_v25, %v3517_v36 }
 0x1ac   : > { %v1624_v0 = vpop.f32.mrf.mxu0 }
 0x1ad   : > { %v3754_v50 = vadd.f32 %v1622_v26, %v1534_v37 }
 0x1b0   : > { %v1446_v61 = vpop.f32.mrf.mxu2 }
 0x1b1   : > { %v1447_v11 = vadd.f32 %v1446_v61, %v1358_v52  ;;  %v1535_v6 = vpop.f32.mrf.mxu3 }
 0x1b2   : > { %v1360_v14 = vpop.f32.mrf.mxu1 }
 0x1b3   : > { %v1536_v16 = vadd.f32 %v1535_v6, %v1447_v11  ;;  %v1361_v54 = vadd.f32 %v1360_v14, %v3533_v42 }
 0x1b4   : > { %v1627_v49 = vpop.f32.mrf.mxu0 }
 0x1b5   : > { %1675 = vmatmul.bf16.gmra.mxu1 %v3469_v57  ;;  %1764 = vmatmul.bf16.gmra.mxu2 %v3441_v30  ;;  %v3759_v22 = vadd.f32 %v1624_v0, %v1536_v16 }
 0x1b6   : > { %1853 = vmatmul.bf16.gmra.mxu3 %v3471_v58 }
 0x1b7   : > { %1942 = vmatmul.bf16.gmra.mxu0 %v3481_v3 }
 0x1b8   : > { %v1449_v59 = vpop.f32.mrf.mxu2 }
 0x1b9   : > { %v1450_v36 = vadd.f32 %v1449_v59, %v1361_v54  ;;  %v1538_v51 = vpop.f32.mrf.mxu3 }
 0x1ba   : > { %v1362_v41 = vpop.f32.mrf.mxu1 }
 0x1bb   : > { %v1539_v26 = vadd.f32 %v1538_v51, %v1450_v36  ;;  %v1363_v57 = vadd.f32 %v1362_v41, %v3545_v55 }
 0x1bc   : > { %v1629_v39 = vpop.f32.mrf.mxu0 }
 0x1bd   : > { %v3764_v17 = vadd.f32 %v1627_v49, %v1539_v26 }
 0x1c0   : > { %v1451_v63 = vpop.f32.mrf.mxu2 }
 0x1c1   : > { %v1452_v30 = vadd.f32 %v1451_v63, %v1363_v57  ;;  %v1540_v44 = vpop.f32.mrf.mxu3 }
 0x1c2   : > { %v1365_v25 = vpop.f32.mrf.mxu1 }
 0x1c3   : > { %v1541_v37 = vadd.f32 %v1540_v44, %v1452_v30  ;;  %v1366_v0 = vadd.f32 %v1365_v25, %v3561_v1 }
 0x1c4   : > { %v1632_v58 = vpop.f32.mrf.mxu0 }
 0x1c5   : > { %1680 = vmatmul.bf16.gmra.mxu1 %v3481_v3  ;;  %1769 = vmatmul.bf16.gmra.mxu2 %v3378_v18  ;;  %v3769_v42 = vadd.f32 %v1629_v39, %v1541_v37 }
 0x1c6   : > { %1858 = vmatmul.bf16.gmra.mxu3 %v3483_v4 }
 0x1c7   : > { %1947 = vmatmul.bf16.gmra.mxu0 %v3493_v13 }
 0x1c8   : > { %v1454_v52 = vpop.f32.mrf.mxu2 }
 0x1c9   : > { %v1455_v55 = vadd.f32 %v1454_v52, %v1366_v0  ;;  %v1543_v61 = vpop.f32.mrf.mxu3  ;;  %v4125_v0 = vld [vmem:[#allocation34_spill] sm:$0xff] }
 0x1ca   : > { %v1367_v11 = vpop.f32.mrf.mxu1  ;;  %v4126_v52 = vld [vmem:[#allocation30_spill] sm:$0xff] }
 0x1cb   : > { %v1544_v6 = vadd.f32 %v1543_v61, %v1455_v55  ;;  %v1368_v3 = vadd.f32 %v1367_v11, %v3573_v32 }
 0x1cc   : > { %v1634_v14 = vpop.f32.mrf.mxu0 }
 0x1cd   : > { %v3774_v16 = vadd.f32 %v1632_v58, %v1544_v6 }
 0x1d0   : > { %v1456_v49 = vpop.f32.mrf.mxu2 }
 0x1d1   : > { %v1457_v18 = vadd.f32 %v1456_v49, %v1368_v3  ;;  %v1545_v54 = vpop.f32.mrf.mxu3 }
 0x1d2   : > { %v1370_v59 = vpop.f32.mrf.mxu1 }
 0x1d3   : > { %v1546_v36 = vadd.f32 %v1545_v54, %v1457_v18  ;;  %v1371_v51 = vadd.f32 %v1370_v59, %v3589_v53  ;;  %v4127_v18 = vld [vmem:[#allocation31_spill] sm:$0xff] }
 0x1d4   : > { %v1637_v4 = vpop.f32.mrf.mxu0 }
 0x1d5   : > { %1685 = vmatmul.bf16.gmra.mxu1 %v3493_v13  ;;  %1774 = vmatmul.bf16.gmra.mxu2 %v3395_v46  ;;  %v3779_v1 = vadd.f32 %v1634_v14, %v1546_v36 }
 0x1d6   : > { %1863 = vmatmul.bf16.gmra.mxu3 %v3497_v15 }
 0x1d7   : > { %1952 = vmatmul.bf16.gmra.mxu0 %v3521_v38 }
 0x1d8   : > { %v1459_v41 = vpop.f32.mrf.mxu2 }
 0x1d9   : > { %v1460_v32 = vadd.f32 %v1459_v41, %v1371_v51  ;;  %v1548_v26 = vpop.f32.mrf.mxu3  ;;  %v4128_v51 = vld [vmem:[#allocation28_spill] sm:$0xff] }
 0x1da   : > { %v1372_v39 = vpop.f32.mrf.mxu1 }
 0x1db   : > { %v1549_v57 = vadd.f32 %v1548_v26, %v1460_v32  ;;  %v1373_v13 = vadd.f32 %v1372_v39, %v3601_v24  ;;  %v4129_v32 = vld [vmem:[#allocation35_spill] sm:$0xff]  ;;  %v4130_v26 = vld [vmem:[#allocation38_spill] sm:$0xff]  ;;  %v4131_v39 = vld [vmem:[#allocation32_spill] sm:$0xff] }
 0x1dc   : > { %v1639_v63 = vpop.f32.mrf.mxu0 }
 0x1dd   : > { %v3784_v30 = vadd.f32 %v1637_v4, %v1549_v57 }
 0x1e0   : > { %v1461_v44 = vpop.f32.mrf.mxu2 }
 0x1e1   : > { %v1462_v46 = vadd.f32 %v1461_v44, %v1373_v13  ;;  %v1550_v25 = vpop.f32.mrf.mxu3 }
 0x1e2   : > { %v1375_v37 = vpop.f32.mrf.mxu1 }
 0x1e3   : > { %v1551_v58 = vadd.f32 %v1550_v25, %v1462_v46  ;;  %v1376_v55 = vadd.f32 %v1375_v37, %v4126_v52 }
 0x1e4   : > { %v1642_v15 = vpop.f32.mrf.mxu0 }
 0x1e5   : > { %1690 = vmatmul.bf16.gmra.mxu1 %v3521_v38  ;;  %1779 = vmatmul.bf16.gmra.mxu2 %v3415_v8  ;;  %v3789_v53 = vadd.f32 %v1639_v63, %v1551_v58 }
 0x1e6   : > { %1868 = vmatmul.bf16.gmra.mxu3 %v3525_v40 }
 0x1e7   : > { %1957 = vmatmul.bf16.gmra.mxu0 %v4125_v0 }
 0x1e8   : > { %v1464_v61 = vpop.f32.mrf.mxu2 }
 0x1e9   : > { %v1465_v24 = vadd.f32 %v1464_v61, %v1376_v55  ;;  %v1553_v11 = vpop.f32.mrf.mxu3 }
 0x1ea   : > { %v1377_v6 = vpop.f32.mrf.mxu1 }
 0x1eb   : > { %v1554_v14 = vadd.f32 %v1553_v11, %v1465_v24  ;;  %v1378_v38 = vadd.f32 %v1377_v6, %v4127_v18  ;;  %v4134_v18 = vld [vmem:[#allocation39_spill] sm:$0xff] }
 0x1ec   : > { %v1644_v3 = vpop.f32.mrf.mxu0 }
 0x1ed   : > { %v3794_v49 = vadd.f32 %v1642_v15, %v1554_v14  ;;  %v4132_v15 = vld [vmem:[#allocation33_spill] sm:$0xff]  ;;  %v4133_v14 = vld [vmem:[#allocation23_spill] sm:$0xff] }
 0x1f0   : > { %v1466_v54 = vpop.f32.mrf.mxu2 }
 0x1f1   : > { %v1467_v8 = vadd.f32 %v1466_v54, %v1378_v38  ;;  %v1555_v59 = vpop.f32.mrf.mxu3  ;;  %v4135_v38 = vld [vmem:[#allocation42_spill] sm:$0xff]  ;;  %v4136_v54 = vld [vmem:[#allocation36_spill] sm:$0xff] }
 0x1f2   : > { %v1380_v36 = vpop.f32.mrf.mxu1 }
 0x1f3   : > { %v1556_v4 = vadd.f32 %v1555_v59, %v1467_v8  ;;  %v1381_v57 = vadd.f32 %v1380_v36, %v4131_v39 }
 0x1f4   : > { %v1647_v40 = vpop.f32.mrf.mxu0 }
 0x1f5   : > { %1695 = vmatmul.bf16.gmra.mxu1 %v4125_v0  ;;  %1784 = vmatmul.bf16.gmra.mxu2 %v4128_v51  ;;  %v3799_v41 = vadd.f32 %v1644_v3, %v1556_v4 }
 0x1f6   : > { %1873 = vmatmul.bf16.gmra.mxu3 %v4129_v32 }
 0x1f7   : > { %1962 = vmatmul.bf16.gmra.mxu0 %v4130_v26 }
 0x1f8   : > { %v1469_v63 = vpop.f32.mrf.mxu2 }
 0x1f9   : > { %v1470_v13 = vadd.f32 %v1469_v63, %v1381_v57  ;;  %v1558_v44 = vpop.f32.mrf.mxu3  ;;  %v4137_v57 = vld [vmem:[#allocation37_spill] sm:$0xff] }
 0x1fa   : > { %v1382_v46 = vpop.f32.mrf.mxu1 }
 0x1fb   : > { %v1559_v25 = vadd.f32 %v1558_v44, %v1470_v13  ;;  %v1383_v0 = vadd.f32 %v1382_v46, %v4132_v15  ;;  %v4138_v15 = vld [vmem:[#allocation25_spill] sm:$0xff] }
 0x1fc   : > { %v1649_v37 = vpop.f32.mrf.mxu0 }
 0x1fd   : > { %v3804_v58 = vadd.f32 %v1647_v40, %v1559_v25 }
 0x200   : > { %v1471_v52 = vpop.f32.mrf.mxu2 }
 0x201   : > { %v1472_v55 = vadd.f32 %v1471_v52, %v1383_v0  ;;  %v1560_v61 = vpop.f32.mrf.mxu3  ;;  %v4139_v52 = vld [vmem:[#allocation40_spill] sm:$0xff] }
 0x202   : > { %v1385_v24 = vpop.f32.mrf.mxu1 }
 0x203   : > { %v1561_v11 = vadd.f32 %v1560_v61, %v1472_v55  ;;  %v1386_v8 = vadd.f32 %v1385_v24, %v4136_v54 }
 0x204   : > { %v1652_v6 = vpop.f32.mrf.mxu0 }
 0x205   : > { %1700 = vmatmul.bf16.gmra.mxu1 %v4130_v26  ;;  %1789 = vmatmul.bf16.gmra.mxu2 %v4133_v14  ;;  %v3809_v3 = vadd.f32 %v1649_v37, %v1561_v11 }
 0x206   : > { %1878 = vmatmul.bf16.gmra.mxu3 %v4134_v18 }
 0x207   : > { %1967 = vmatmul.bf16.gmra.mxu0 %v4135_v38 }
 0x208   : > { %v1474_v59 = vpop.f32.mrf.mxu2 }
 0x209   : > { %v1475_v36 = vadd.f32 %v1474_v59, %v1386_v8  ;;  %v1563_v4 = vpop.f32.mrf.mxu3  ;;  %v4140_v8 = vld [vmem:[#allocation41_spill] sm:$0xff] }
 0x20a   : > { %v1387_v40 = vpop.f32.mrf.mxu1 }
 0x20b   : > { %v1564_v51 = vadd.f32 %v1563_v4, %v1475_v36  ;;  %v1388_v26 = vadd.f32 %v1387_v40, %v4137_v57 }
 0x20c   : > { %v1654_v32 = vpop.f32.mrf.mxu0 }
 0x20d   : > { %v3814_v39 = vadd.f32 %v1652_v6, %v1564_v51 }
 0x210   : > { %v1476_v63 = vpop.f32.mrf.mxu2 }
 0x211   : > { %v1477_v13 = vadd.f32 %v1476_v63, %v1388_v26  ;;  %v1565_v44 = vpop.f32.mrf.mxu3  ;;  %v4142_v26 = vld [vmem:[#allocation43_spill] sm:$0xff] }
 0x212   : > { %v1390_v46 = vpop.f32.mrf.mxu1 }
 0x213   : > { %v1566_v25 = vadd.f32 %v1565_v44, %v1477_v13  ;;  %v1391_v55 = vadd.f32 %v1390_v46, %v4139_v52 }
 0x214   : > { %v1657_v37 = vpop.f32.mrf.mxu0 }
 0x215   : > { %1705 = vmatmul.bf16.gmra.mxu1 %v4135_v38  ;;  %1794 = vmatmul.bf16.gmra.mxu2 %v4138_v15  ;;  %v3819_v0 = vadd.f32 %v1654_v32, %v1566_v25  ;;  %v4141_v32 = vld [vmem:[#allocation26_spill] sm:$0xff]  ;;  %v3837_v15 = vld [vmem:[%s4056_s2] ss:$0 sm:$0xff] }
 0x216   : > { %1883 = vmatmul.bf16.gmra.mxu3 %v3607_v19 }
 0x217   : > { %1972 = vmatmul.bf16.gmra.mxu0 %v3621_v56 }
 0x218   : > { %v1479_v61 = vpop.f32.mrf.mxu2 }
 0x219   : > { %v1480_v24 = vadd.f32 %v1479_v61, %v1391_v55  ;;  %v1568_v11 = vpop.f32.mrf.mxu3  ;;  %v4143_v61 = vld [vmem:[#allocation44_spill] sm:$0xff] }
 0x21a   : > { %v1392_v6 = vpop.f32.mrf.mxu1 }
 0x21b   : > { %v1569_v14 = vadd.f32 %v1568_v11, %v1480_v24  ;;  %v1393_v38 = vadd.f32 %v1392_v6, %v4140_v8 }
 0x21c   : > { %v1659_v18 = vpop.f32.mrf.mxu0 }
 0x21d   : > { %v3824_v54 = vadd.f32 %v1657_v37, %v1569_v14 }
 0x220   : > { %v1481_v59 = vpop.f32.mrf.mxu2 }
 0x221   : > { %v1482_v36 = vadd.f32 %v1481_v59, %v1393_v38  ;;  %v1570_v4 = vpop.f32.mrf.mxu3 }
 0x222   : > { %v1671_v40 = vpop.f32.mrf.mxu1 }
 0x223   : > { %v1571_v51 = vadd.f32 %v1570_v4, %v1482_v36  ;;  %v1672_v63 = vadd.f32 %v1671_v40, %v4142_v26 }
 0x224   : > { %v1938_v19 = vpop.f32.mrf.mxu0 }
 0x225   : > { %1710 = vmatmul.bf16.gmra.mxu1 %v3621_v56  ;;  %1799 = vmatmul.bf16.gmra.mxu2 %v4141_v32  ;;  %v3829_v57 = vadd.f32 %v1659_v18, %v1571_v51 }
 0x226   : > { %1888 = vmatmul.bf16.gmra.mxu3 %v3623_v12  ;;  %v3842_v12 = vld [vmem:[%s4057_s3] ss:$0 sm:$0xff] }
 0x227   : > { %1977 = vmatmul.bf16.gmra.mxu0 %v3639_v33 }
 0x228   : > { %v1760_v13 = vpop.f32.mrf.mxu2 }
 0x229   : > { %v1761_v44 = vadd.f32 %v1760_v13, %v1672_v63  ;;  %v1849_v46 = vpop.f32.mrf.mxu3 }
 0x22a   : > { %v1673_v25 = vpop.f32.mrf.mxu1 }
 0x22b   : > { %v1850_v37 = vadd.f32 %v1849_v46, %v1761_v44  ;;  %v1674_v24 = vadd.f32 %v1673_v25, %v4143_v61  ;;  %v4144_v25 = vld [vmem:[#allocation45_spill] sm:$0xff] }
 0x22c   : > { %v1940_v56 = vpop.f32.mrf.mxu0 }
 0x22d   : > { %v1939_v52 = vadd.f32 %v1938_v19, %v1850_v37 }
 0x22f   : > { %v2022_v55 = vmul.f32 %v3837_v15, %v1939_v52 }
 0x230   : > { %v1762_v11 = vpop.f32.mrf.mxu2 }
 0x231   : > { %v2058_v6 = vadd.f32 %v3842_v12, %v2022_v55  ;;  %v1763_v14 = vadd.f32 %v1762_v11, %v1674_v24  ;;  %v1851_v18 = vpop.f32.mrf.mxu3 }
 0x232   : > { %v1676_v8 = vpop.f32.mrf.mxu1 }
 0x233   : > { %v2090_v38 = vmax.f32 %v2058_v6, 0.0  ;;  %v1852_v59 = vadd.f32 %v1851_v18, %v1763_v14  ;;  %v1677_v51 = vadd.f32 %v1676_v8, %v3633_v2  ;;  %v4145_v18 = vld [vmem:[#allocation24_spill] sm:$0xff] }
 0x234   : > { %v1943_v36 = vpop.f32.mrf.mxu0 }
 0x235   : > { %2122 = vst [vmem:[%s3848_s10] sm:$0xff] %v2090_v38  ;;  %v1941_v4 = vadd.f32 %v1940_v56, %v1852_v59  ;;  %1715 = vmatmul.bf16.gmra.mxu1 %v3639_v33  ;;  %1804 = vmatmul.bf16.gmra.mxu2 %v3437_v28  ;;  %v4146_v38 = vld [vmem:[#allocation46_spill] sm:$0xff] }
 0x236   : > { %1893 = vmatmul.bf16.gmra.mxu3 %v3641_v9 }
 0x237   : > { %1982 = vmatmul.bf16.gmra.mxu0 %v3657_v27  ;;  %v2023_v40 = vmul.f32 %v3837_v15, %v1941_v4 }
 0x238   : > { %v1765_v19 = vpop.f32.mrf.mxu2 }
 0x239   : > { %v2059_v32 = vadd.f32 %v3842_v12, %v2023_v40  ;;  %v1766_v26 = vadd.f32 %v1765_v19, %v1677_v51  ;;  %v1854_v63 = vpop.f32.mrf.mxu3 }
 0x23a   : > { %v1678_v13 = vpop.f32.mrf.mxu1 }
 0x23b   : > { %v2091_v44 = vmax.f32 %v2059_v32, 0.0  ;;  %v1855_v46 = vadd.f32 %v1854_v63, %v1766_v26  ;;  %v1679_v37 = vadd.f32 %v1678_v13, %v4144_v25  ;;  %v4147_v13 = vld [vmem:[#allocation47_spill] sm:$0xff] }
 0x23c   : > { %v1945_v33 = vpop.f32.mrf.mxu0 }
 0x23d   : > { %2123 = vst [vmem:[%s3848_s10 + $0x8] sm:$0xff] %v2091_v44  ;;  %v1944_v28 = vadd.f32 %v1943_v36, %v1855_v46 }
 0x23f   : > { %v2024_v9 = vmul.f32 %v3837_v15, %v1944_v28 }
 0x240   : > { %v1767_v56 = vpop.f32.mrf.mxu2 }
 0x241   : > { %v2060_v52 = vadd.f32 %v3842_v12, %v2024_v9  ;;  %v1768_v2 = vadd.f32 %v1767_v56, %v1679_v37  ;;  %v1856_v55 = vpop.f32.mrf.mxu3 }
 0x242   : > { %v1681_v61 = vpop.f32.mrf.mxu1 }
 0x243   : > { %v2092_v24 = vmax.f32 %v2060_v52, 0.0  ;;  %v1857_v11 = vadd.f32 %v1856_v55, %v1768_v2  ;;  %v1682_v59 = vadd.f32 %v1681_v61, %v4146_v38 }
 0x244   : > { %v1948_v6 = vpop.f32.mrf.mxu0 }
 0x245   : > { %2124 = vst [vmem:[%s3848_s10 + $0x10] sm:$0xff] %v2092_v24  ;;  %v1946_v14 = vadd.f32 %v1945_v33, %v1857_v11  ;;  %1720 = vmatmul.bf16.gmra.mxu1 %v3657_v27  ;;  %1809 = vmatmul.bf16.gmra.mxu2 %v4145_v18 }
 0x246   : > { %1898 = vmatmul.bf16.gmra.mxu3 %v3659_v62 }
 0x247   : > { %1987 = vmatmul.bf16.gmra.mxu0 %v3675_v23  ;;  %v2025_v8 = vmul.f32 %v3837_v15, %v1946_v14 }
 0x248   : > { %v1770_v36 = vpop.f32.mrf.mxu2 }
 0x249   : > { %v2061_v4 = vadd.f32 %v3842_v12, %v2025_v8  ;;  %v1771_v40 = vadd.f32 %v1770_v36, %v1682_v59  ;;  %v1859_v51 = vpop.f32.mrf.mxu3  ;;  %v4148_v59 = vld [vmem:[#allocation48_spill] sm:$0xff] }
 0x24a   : > { %v1683_v19 = vpop.f32.mrf.mxu1 }
 0x24b   : > { %v2093_v32 = vmax.f32 %v2061_v4, 0.0  ;;  %v1860_v26 = vadd.f32 %v1859_v51, %v1771_v40  ;;  %v1684_v44 = vadd.f32 %v1683_v19, %v4147_v13 }
 0x24c   : > { %v1950_v27 = vpop.f32.mrf.mxu0 }
 0x24d   : > { %2125 = vst [vmem:[%s3848_s10 + $0x18] sm:$0xff] %v2093_v32  ;;  %v1949_v63 = vadd.f32 %v1948_v6, %v1860_v26 }
 0x24f   : > { %v2026_v62 = vmul.f32 %v3837_v15, %v1949_v63 }
 0x250   : > { %v1772_v46 = vpop.f32.mrf.mxu2 }
 0x251   : > { %v2062_v33 = vadd.f32 %v3842_v12, %v2026_v62  ;;  %v1773_v28 = vadd.f32 %v1772_v46, %v1684_v44  ;;  %v1861_v9 = vpop.f32.mrf.mxu3  ;;  %v4149_v62 = vld [vmem:[#allocation27_spill] sm:$0xff]  ;;  %v4150_v44 = vld [vmem:[#allocation49_spill] sm:$0xff] }
 0x252   : > { %v1686_v25 = vpop.f32.mrf.mxu1 }
 0x253   : > { %v2094_v37 = vmax.f32 %v2062_v33, 0.0  ;;  %v1862_v56 = vadd.f32 %v1861_v9, %v1773_v28  ;;  %v1687_v61 = vadd.f32 %v1686_v25, %v3669_v7 }
 0x254   : > { %v1953_v52 = vpop.f32.mrf.mxu0 }
 0x255   : > { %2126 = vst [vmem:[%s3848_s10 + $0x20] sm:$0xff] %v2094_v37  ;;  %v1951_v2 = vadd.f32 %v1950_v27, %v1862_v56  ;;  %1725 = vmatmul.bf16.gmra.mxu1 %v3675_v23  ;;  %1814 = vmatmul.bf16.gmra.mxu2 %v3399_v48 }
 0x256   : > { %1903 = vmatmul.bf16.gmra.mxu3 %v3677_v20 }
 0x257   : > { %1992 = vmatmul.bf16.gmra.mxu0 %v3693_v45  ;;  %v2027_v55 = vmul.f32 %v3837_v15, %v1951_v2 }
 0x258   : > { %v1775_v24 = vpop.f32.mrf.mxu2 }
 0x259   : > { %v2063_v11 = vadd.f32 %v3842_v12, %v2027_v55  ;;  %v1776_v6 = vadd.f32 %v1775_v24, %v1687_v61  ;;  %v1864_v14 = vpop.f32.mrf.mxu3  ;;  %v4151_v55 = vld [vmem:[#allocation50_spill] sm:$0xff] }
 0x25a   : > { %v1688_v18 = vpop.f32.mrf.mxu1 }
 0x25b   : > { %v2095_v8 = vmax.f32 %v2063_v11, 0.0  ;;  %v1865_v38 = vadd.f32 %v1864_v14, %v1776_v6  ;;  %v1689_v36 = vadd.f32 %v1688_v18, %v4148_v59 }
 0x25c   : > { %v1955_v23 = vpop.f32.mrf.mxu0 }
 0x25d   : > { %2127 = vst [vmem:[%s3848_s10 + $0x28] sm:$0xff] %v2095_v8  ;;  %v1954_v48 = vadd.f32 %v1953_v52, %v1865_v38 }
 0x25f   : > { %v2028_v20 = vmul.f32 %v3837_v15, %v1954_v48 }
 0x260   : > { %v1777_v4 = vpop.f32.mrf.mxu2 }
 0x261   : > { %v2064_v40 = vadd.f32 %v3842_v12, %v2028_v20  ;;  %v1778_v7 = vadd.f32 %v1777_v4, %v1689_v36  ;;  %v1866_v51 = vpop.f32.mrf.mxu3  ;;  %v4152_v20 = vld [vmem:[#allocation29_spill] sm:$0xff]  ;;  %v4153_v36 = vld [vmem:[#allocation51_spill] sm:$0xff] }
 0x262   : > { %v1691_v19 = vpop.f32.mrf.mxu1 }
 0x263   : > { %v2096_v32 = vmax.f32 %v2064_v40, 0.0  ;;  %v1867_v26 = vadd.f32 %v1866_v51, %v1778_v7  ;;  %v1692_v46 = vadd.f32 %v1691_v19, %v4150_v44  ;;  %v2510_v44 = vld [vmem:[%s3360_s14 + $0x188] sm:$0xf] }
 0x264   : > { %v1958_v27 = vpop.f32.mrf.mxu0 }
 0x265   : > { %2128 = vst [vmem:[%s3848_s10 + $0x30] sm:$0xff] %v2096_v32  ;;  %v1956_v63 = vadd.f32 %v1955_v23, %v1867_v26  ;;  %1730 = vmatmul.bf16.gmra.mxu1 %v3693_v45  ;;  %1819 = vmatmul.bf16.gmra.mxu2 %v4149_v62  ;;  %v4154_v62 = vld [vmem:[#allocation52_spill] sm:$0xff] }
 0x266   : > { %1908 = vmatmul.bf16.gmra.mxu3 %v3695_v43 }
 0x267   : > { %1997 = vmatmul.bf16.gmra.mxu0 %v3711_v10  ;;  %v2029_v13 = vmul.f32 %v3837_v15, %v1956_v63 }
 0x268   : > { %v1780_v33 = vpop.f32.mrf.mxu2 }
 0x269   : > { %v2065_v28 = vadd.f32 %v3842_v12, %v2029_v13  ;;  %v1781_v9 = vadd.f32 %v1780_v33, %v1692_v46  ;;  %v1869_v25 = vpop.f32.mrf.mxu3  ;;  %v2868_v46 = vld [vmem:[%s3360_s14 + $0x190] sm:$0xf0] }
 0x26a   : > { %v1693_v37 = vpop.f32.mrf.mxu1 }
 0x26b   : > { %v2097_v56 = vmax.f32 %v2065_v28, 0.0  ;;  %v1870_v52 = vadd.f32 %v1869_v25, %v1781_v9  ;;  %v1694_v61 = vadd.f32 %v1693_v37, %v4151_v55 }
 0x26c   : > { %v1960_v45 = vpop.f32.mrf.mxu0 }
 0x26d   : > { %2129 = vst [vmem:[%s3848_s10 + $0x38] sm:$0xff] %v2097_v56  ;;  %v1959_v2 = vadd.f32 %v1958_v27, %v1870_v52  ;;  %v2511_v56 = vor.u32 %v2868_v46, %v2510_v44 }
 0x26f   : > { %v2030_v43 = vmul.f32 %v3837_v15, %v1959_v2 }
 0x270   : > { %v1782_v24 = vpop.f32.mrf.mxu2 }
 0x271   : > { %v2066_v11 = vadd.f32 %v3842_v12, %v2030_v43  ;;  %v1783_v6 = vadd.f32 %v1782_v24, %v1694_v61  ;;  %v1871_v14 = vpop.f32.mrf.mxu3 }
 0x272   : > { %v1696_v18 = vpop.f32.mrf.mxu1 }
 0x273   : > { %v2098_v8 = vmax.f32 %v2066_v11, 0.0  ;;  %v1872_v38 = vadd.f32 %v1871_v14, %v1783_v6  ;;  %v1697_v4 = vadd.f32 %v1696_v18, %v4153_v36  ;;  %v2522_v36 = vld [vmem:[%s3360_s14 + $0x1a0] sm:$0xf] }
 0x274   : > { %v1963_v23 = vpop.f32.mrf.mxu0 }
 0x275   : > { %2130 = vst [vmem:[%s3848_s10 + $0x40] sm:$0xff] %v2098_v8  ;;  %v1961_v48 = vadd.f32 %v1960_v45, %v1872_v38  ;;  %1735 = vmatmul.bf16.gmra.mxu1 %v3711_v10  ;;  %1824 = vmatmul.bf16.gmra.mxu2 %v4152_v20  ;;  %v2514_v38 = vld [vmem:[%s3360_s14 + $0x198] sm:$0xf] }
 0x276   : > { %1913 = vmatmul.bf16.gmra.mxu3 %v3713_v21 }
 0x277   : > { %2002 = vmatmul.bf16.gmra.mxu0 %v3731_v60  ;;  %v2031_v59 = vmul.f32 %v3837_v15, %v1961_v48  ;;  %v2869_v48 = vld [vmem:[%s3360_s14 + $0x19c] sm:$0xf] }
 0x278   : > { %v1785_v40 = vpop.f32.mrf.mxu2 }
 0x279   : > { %v2067_v7 = vadd.f32 %v3842_v12, %v2031_v59  ;;  %v1786_v51 = vadd.f32 %v1785_v40, %v1697_v4  ;;  %v1874_v19 = vpop.f32.mrf.mxu3  ;;  %v2516_v59 = vld [vmem:[%s3360_s14 + $0x1a4] sm:$0xf0]  ;;  %v2871_v4 = vld [vmem:[%s3360_s14 + $0x1a8] sm:$0xf0] }
 0x27a   : > { %v1698_v32 = vpop.f32.mrf.mxu1 }
 0x27b   : > { %v2099_v26 = vmax.f32 %v2067_v7, 0.0  ;;  %v1875_v10 = vadd.f32 %v1874_v19, %v1786_v51  ;;  %v1699_v13 = vadd.f32 %v1698_v32, %v4154_v62 }
 0x27c   : > { %v1965_v27 = vpop.f32.mrf.mxu0 }
 0x27d   : > { %2131 = vst [vmem:[%s3848_s10 + $0x48] sm:$0xff] %v2099_v26  ;;  %v1964_v21 = vadd.f32 %v1963_v23, %v1875_v10  ;;  %v2870_v23 = vld [vmem:[%s3360_s14 + $0x1a0] sm:$0xf0]  ;;  %v2519_v10 = vor.u32 %v2869_v48, %v2516_v59 }
 0x27e   : > { %v2515_v32 = vor.u32 %v2870_v23, %v2514_v38 }
 0x27f   : > { %v2032_v63 = vmul.f32 %v3837_v15, %v1964_v21 }
 0x280   : > { %v1787_v33 = vpop.f32.mrf.mxu2 }
 0x281   : > { %v2068_v28 = vadd.f32 %v3842_v12, %v2032_v63  ;;  %v1788_v9 = vadd.f32 %v1787_v33, %v1699_v13  ;;  %v1876_v25 = vpop.f32.mrf.mxu3 }
 0x282   : > { %v1701_v37 = vpop.f32.mrf.mxu1 }
 0x283   : > { %v2100_v52 = vmax.f32 %v2068_v28, 0.0  ;;  %v1877_v45 = vadd.f32 %v1876_v25, %v1788_v9  ;;  %v1702_v61 = vadd.f32 %v1701_v37, %v3722_v34 }
 0x284   : > { %v1968_v2 = vpop.f32.mrf.mxu0 }
 0x285   : > { %2132 = vst [vmem:[%s3848_s10 + $0x50] sm:$0xff] %v2100_v52  ;;  %v1966_v43 = vadd.f32 %v1965_v27, %v1877_v45  ;;  %1740 = vmatmul.bf16.gmra.mxu1 %v3731_v60  ;;  %1829 = vmatmul.bf16.gmra.mxu2 %v3733_v47  ;;  %v2523_v27 = vor.u32 %v2871_v4, %v2522_v36 }
 0x286   : > { %1918 = vmatmul.bf16.gmra.mxu3 %v3735_v31 }
 0x287   : > { %2007 = vmatmul.bf16.gmra.mxu0 %v2511_v56  ;;  %v2033_v55 = vmul.f32 %v3837_v15, %v1966_v43 }
 0x288   : > { %v1790_v24 = vpop.f32.mrf.mxu2 }
 0x289   : > { %v2069_v11 = vadd.f32 %v3842_v12, %v2033_v55  ;;  %v1791_v6 = vadd.f32 %v1790_v24, %v1702_v61  ;;  %v1879_v60 = vpop.f32.mrf.mxu3 }
 0x28a   : > { %v1703_v14 = vpop.f32.mrf.mxu1 }
 0x28b   : > { %v2101_v18 = vmax.f32 %v2069_v11, 0.0  ;;  %v1880_v47 = vadd.f32 %v1879_v60, %v1791_v6  ;;  %v1704_v34 = vadd.f32 %v1703_v14, %v3739_v5 }
 0x28c   : > { %v1970_v8 = vpop.f32.mrf.mxu0 }
 0x28d   : > { %2133 = vst [vmem:[%s3848_s10 + $0x58] sm:$0xff] %v2101_v18  ;;  %v1969_v31 = vadd.f32 %v1968_v2, %v1880_v47 }
 0x28f   : > { %v2034_v20 = vmul.f32 %v3837_v15, %v1969_v31 }
 0x290   : > { %v1792_v40 = vpop.f32.mrf.mxu2 }
 0x291   : > { %v2070_v7 = vadd.f32 %v3842_v12, %v2034_v20  ;;  %v1793_v51 = vadd.f32 %v1792_v40, %v1704_v34  ;;  %v1881_v19 = vpop.f32.mrf.mxu3 }
 0x292   : > { %v1706_v26 = vpop.f32.mrf.mxu1 }
 0x293   : > { %v2102_v21 = vmax.f32 %v2070_v7, 0.0  ;;  %v1882_v63 = vadd.f32 %v1881_v19, %v1793_v51  ;;  %v1707_v44 = vadd.f32 %v1706_v26, %v3744_v29 }
 0x294   : > { %v1973_v62 = vpop.f32.mrf.mxu0 }
 0x295   : > { %2134 = vst [vmem:[%s3848_s10 + $0x60] sm:$0xff] %v2102_v21  ;;  %v1971_v13 = vadd.f32 %v1970_v8, %v1882_v63  ;;  %1745 = vmatmul.bf16.gmra.mxu1 %v2511_v56  ;;  %1834 = vmatmul.bf16.gmra.mxu2 %v2515_v32 }
 0x296   : > { %1923 = vmatmul.bf16.gmra.mxu3 %v2519_v10 }
 0x297   : > { %2012 = vmatmul.bf16.gmra.mxu0 %v2523_v27  ;;  %v2035_v5 = vmul.f32 %v3837_v15, %v1971_v13 }
 0x298   : > { %v1795_v46 = vpop.f32.mrf.mxu2 }
 0x299   : > { %v2071_v33 = vadd.f32 %v3842_v12, %v2035_v5  ;;  %v1796_v28 = vadd.f32 %v1795_v46, %v1707_v44  ;;  %v1884_v9 = vpop.f32.mrf.mxu3 }
 0x29a   : > { %v1708_v25 = vpop.f32.mrf.mxu1 }
 0x29b   : > { %v2103_v37 = vmax.f32 %v2071_v33, 0.0  ;;  %v1885_v52 = vadd.f32 %v1884_v9, %v1796_v28  ;;  %v1709_v43 = vadd.f32 %v1708_v25, %v3749_v35 }
 0x29c   : > { %v1975_v45 = vpop.f32.mrf.mxu0 }
 0x29d   : > { %2135 = vst [vmem:[%s3848_s10 + $0x68] sm:$0xff] %v2103_v37  ;;  %v1974_v2 = vadd.f32 %v1973_v62, %v1885_v52 }
 0x29f   : > { %v2036_v56 = vmul.f32 %v3837_v15, %v1974_v2 }
 0x2a0   : > { %v1797_v55 = vpop.f32.mrf.mxu2 }
 0x2a1   : > { %v2072_v61 = vadd.f32 %v3842_v12, %v2036_v56  ;;  %v1798_v29 = vadd.f32 %v1797_v55, %v1709_v43  ;;  %v1886_v24 = vpop.f32.mrf.mxu3 }
 0x2a2   : > { %v1711_v11 = vpop.f32.mrf.mxu1 }
 0x2a3   : > { %v2104_v6 = vmax.f32 %v2072_v61, 0.0  ;;  %v1887_v60 = vadd.f32 %v1886_v24, %v1798_v29  ;;  %v1712_v8 = vadd.f32 %v1711_v11, %v3754_v50 }
 0x2a4   : > { %v1978_v14 = vpop.f32.mrf.mxu0 }
 0x2a5   : > { %2136 = vst [vmem:[%s3848_s10 + $0x70] sm:$0xff] %v2104_v6  ;;  %v1976_v18 = vadd.f32 %v1975_v45, %v1887_v60 }
 0x2a7   : > { %v2037_v47 = vmul.f32 %v3837_v15, %v1976_v18 }
 0x2a8   : > { %v1800_v31 = vpop.f32.mrf.mxu2 }
 0x2a9   : > { %v2073_v38 = vadd.f32 %v3842_v12, %v2037_v47  ;;  %v1801_v35 = vadd.f32 %v1800_v31, %v1712_v8  ;;  %v1889_v23 = vpop.f32.mrf.mxu3 }
 0x2aa   : > { %v1713_v48 = vpop.f32.mrf.mxu1 }
 0x2ab   : > { %v2105_v20 = vmax.f32 %v2073_v38, 0.0  ;;  %v1890_v34 = vadd.f32 %v1889_v23, %v1801_v35  ;;  %v1714_v40 = vadd.f32 %v1713_v48, %v3759_v22 }
 0x2ac   : > { %v1980_v59 = vpop.f32.mrf.mxu0 }
 0x2ad   : > { %2137 = vst [vmem:[%s3848_s10 + $0x78] sm:$0xff] %v2105_v20  ;;  %v1979_v36 = vadd.f32 %v1978_v14, %v1890_v34 }
 0x2af   : > { %v2038_v4 = vmul.f32 %v3837_v15, %v1979_v36 }
 0x2b0   : > { %v1802_v7 = vpop.f32.mrf.mxu2 }
 0x2b1   : > { %v2074_v51 = vadd.f32 %v3842_v12, %v2038_v4  ;;  %v1803_v50 = vadd.f32 %v1802_v7, %v1714_v40  ;;  %v1891_v19 = vpop.f32.mrf.mxu3 }
 0x2b2   : > { %v1716_v32 = vpop.f32.mrf.mxu1 }
 0x2b3   : > { %v2106_v26 = vmax.f32 %v2074_v51, 0.0  ;;  %v1892_v10 = vadd.f32 %v1891_v19, %v1803_v50  ;;  %v1717_v62 = vadd.f32 %v1716_v32, %v3764_v17 }
 0x2b4   : > { %v1983_v27 = vpop.f32.mrf.mxu0 }
 0x2b5   : > { %2138 = vst [vmem:[%s3848_s10 + $0x80] sm:$0xff] %v2106_v26  ;;  %v1981_v21 = vadd.f32 %v1980_v59, %v1892_v10 }
 0x2b7   : > { %v2039_v63 = vmul.f32 %v3837_v15, %v1981_v21 }
 0x2b8   : > { %v1805_v13 = vpop.f32.mrf.mxu2 }
 0x2b9   : > { %v2075_v5 = vadd.f32 %v3842_v12, %v2039_v63  ;;  %v1806_v22 = vadd.f32 %v1805_v13, %v1717_v62  ;;  %v1894_v44 = vpop.f32.mrf.mxu3 }
 0x2ba   : > { %v1718_v46 = vpop.f32.mrf.mxu1 }
 0x2bb   : > { %v2107_v33 = vmax.f32 %v2075_v5, 0.0  ;;  %v1895_v28 = vadd.f32 %v1894_v44, %v1806_v22  ;;  %v1719_v52 = vadd.f32 %v1718_v46, %v3769_v42 }
 0x2bc   : > { %v1985_v9 = vpop.f32.mrf.mxu0 }
 0x2bd   : > { %2139 = vst [vmem:[%s3848_s10 + $0x88] sm:$0xff] %v2107_v33  ;;  %v1984_v25 = vadd.f32 %v1983_v27, %v1895_v28 }
 0x2bf   : > { %v2040_v37 = vmul.f32 %v3837_v15, %v1984_v25 }
 0x2c0   : > { %v1807_v45 = vpop.f32.mrf.mxu2 }
 0x2c1   : > { %v2076_v2 = vadd.f32 %v3842_v12, %v2040_v37  ;;  %v1808_v17 = vadd.f32 %v1807_v45, %v1719_v52  ;;  %v1896_v56 = vpop.f32.mrf.mxu3 }
 0x2c2   : > { %v1721_v43 = vpop.f32.mrf.mxu1 }
 0x2c3   : > { %v2108_v55 = vmax.f32 %v2076_v2, 0.0  ;;  %v1897_v61 = vadd.f32 %v1896_v56, %v1808_v17  ;;  %v1722_v6 = vadd.f32 %v1721_v43, %v3774_v16 }
 0x2c4   : > { %v1988_v29 = vpop.f32.mrf.mxu0 }
 0x2c5   : > { %2140 = vst [vmem:[%s3848_s10 + $0x90] sm:$0xff] %v2108_v55  ;;  %v1986_v24 = vadd.f32 %v1985_v9, %v1897_v61 }
 0x2c7   : > { %v2041_v11 = vmul.f32 %v3837_v15, %v1986_v24 }
 0x2c8   : > { %v1810_v60 = vpop.f32.mrf.mxu2 }
 0x2c9   : > { %v2077_v14 = vadd.f32 %v3842_v12, %v2041_v11  ;;  %v1811_v42 = vadd.f32 %v1810_v60, %v1722_v6  ;;  %v1899_v18 = vpop.f32.mrf.mxu3 }
 0x2ca   : > { %v1723_v47 = vpop.f32.mrf.mxu1 }
 0x2cb   : > { %v2109_v8 = vmax.f32 %v2077_v14, 0.0  ;;  %v1900_v31 = vadd.f32 %v1899_v18, %v1811_v42  ;;  %v1724_v48 = vadd.f32 %v1723_v47, %v3779_v1 }
 0x2cc   : > { %v1990_v38 = vpop.f32.mrf.mxu0 }
 0x2cd   : > { %2141 = vst [vmem:[%s3848_s10 + $0x98] sm:$0xff] %v2109_v8  ;;  %v1989_v35 = vadd.f32 %v1988_v29, %v1900_v31 }
 0x2cf   : > { %v2042_v23 = vmul.f32 %v3837_v15, %v1989_v35 }
 0x2d0   : > { %v1812_v20 = vpop.f32.mrf.mxu2 }
 0x2d1   : > { %v2078_v34 = vadd.f32 %v3842_v12, %v2042_v23  ;;  %v1813_v16 = vadd.f32 %v1812_v20, %v1724_v48  ;;  %v1901_v59 = vpop.f32.mrf.mxu3 }
 0x2d2   : > { %v1726_v36 = vpop.f32.mrf.mxu1 }
 0x2d3   : > { %v2110_v4 = vmax.f32 %v2078_v34, 0.0  ;;  %v1902_v40 = vadd.f32 %v1901_v59, %v1813_v16  ;;  %v1727_v19 = vadd.f32 %v1726_v36, %v3784_v30 }
 0x2d4   : > { %v1993_v7 = vpop.f32.mrf.mxu0 }
 0x2d5   : > { %2142 = vst [vmem:[%s3848_s10 + $0xa0] sm:$0xff] %v2110_v4  ;;  %v1991_v51 = vadd.f32 %v1990_v38, %v1902_v40 }
 0x2d7   : > { %v2043_v50 = vmul.f32 %v3837_v15, %v1991_v51 }
 0x2d8   : > { %v1815_v32 = vpop.f32.mrf.mxu2 }
 0x2d9   : > { %v2079_v26 = vadd.f32 %v3842_v12, %v2043_v50  ;;  %v1816_v1 = vadd.f32 %v1815_v32, %v1727_v19  ;;  %v1904_v10 = vpop.f32.mrf.mxu3 }
 0x2da   : > { %v1728_v27 = vpop.f32.mrf.mxu1 }
 0x2db   : > { %v2111_v21 = vmax.f32 %v2079_v26, 0.0  ;;  %v1905_v63 = vadd.f32 %v1904_v10, %v1816_v1  ;;  %v1729_v22 = vadd.f32 %v1728_v27, %v3789_v53 }
 0x2dc   : > { %v1995_v62 = vpop.f32.mrf.mxu0 }
 0x2dd   : > { %2143 = vst [vmem:[%s3848_s10 + $0xa8] sm:$0xff] %v2111_v21  ;;  %v1994_v13 = vadd.f32 %v1993_v7, %v1905_v63 }
 0x2df   : > { %v2044_v5 = vmul.f32 %v3837_v15, %v1994_v13 }
 0x2e0   : > { %v1817_v44 = vpop.f32.mrf.mxu2 }
 0x2e1   : > { %v2080_v46 = vadd.f32 %v3842_v12, %v2044_v5  ;;  %v1818_v30 = vadd.f32 %v1817_v44, %v1729_v22  ;;  %v1906_v33 = vpop.f32.mrf.mxu3 }
 0x2e2   : > { %v1731_v28 = vpop.f32.mrf.mxu1 }
 0x2e3   : > { %v2112_v9 = vmax.f32 %v2080_v46, 0.0  ;;  %v1907_v25 = vadd.f32 %v1906_v33, %v1818_v30  ;;  %v1732_v2 = vadd.f32 %v1731_v28, %v3794_v49 }
 0x2e4   : > { %v1998_v37 = vpop.f32.mrf.mxu0 }
 0x2e5   : > { %2144 = vst [vmem:[%s3848_s10 + $0xb0] sm:$0xff] %v2112_v9  ;;  %v1996_v52 = vadd.f32 %v1995_v62, %v1907_v25 }
 0x2e7   : > { %v2045_v45 = vmul.f32 %v3837_v15, %v1996_v52 }
 0x2e8   : > { %v1820_v17 = vpop.f32.mrf.mxu2 }
 0x2e9   : > { %v2081_v56 = vadd.f32 %v3842_v12, %v2045_v45  ;;  %v1821_v53 = vadd.f32 %v1820_v17, %v1732_v2  ;;  %v1909_v43 = vpop.f32.mrf.mxu3 }
 0x2ea   : > { %v1733_v55 = vpop.f32.mrf.mxu1 }
 0x2eb   : > { %v2113_v61 = vmax.f32 %v2081_v56, 0.0  ;;  %v1910_v29 = vadd.f32 %v1909_v43, %v1821_v53  ;;  %v1734_v60 = vadd.f32 %v1733_v55, %v3799_v41 }
 0x2ec   : > { %v2000_v24 = vpop.f32.mrf.mxu0 }
 0x2ed   : > { %2145 = vst [vmem:[%s3848_s10 + $0xb8] sm:$0xff] %v2113_v61  ;;  %v1999_v11 = vadd.f32 %v1998_v37, %v1910_v29 }
 0x2ef   : > { %v2046_v6 = vmul.f32 %v3837_v15, %v1999_v11 }
 0x2f0   : > { %v1822_v14 = vpop.f32.mrf.mxu2 }
 0x2f1   : > { %v2082_v42 = vadd.f32 %v3842_v12, %v2046_v6  ;;  %v1823_v49 = vadd.f32 %v1822_v14, %v1734_v60  ;;  %v1911_v18 = vpop.f32.mrf.mxu3 }
 0x2f2   : > { %v1736_v47 = vpop.f32.mrf.mxu1 }
 0x2f3   : > { %v2114_v8 = vmax.f32 %v2082_v42, 0.0  ;;  %v1912_v31 = vadd.f32 %v1911_v18, %v1823_v49  ;;  %v1737_v48 = vadd.f32 %v1736_v47, %v3804_v58 }
 0x2f4   : > { %v2003_v38 = vpop.f32.mrf.mxu0 }
 0x2f5   : > { %2146 = vst [vmem:[%s3848_s10 + $0xc0] sm:$0xff] %v2114_v8  ;;  %v2001_v35 = vadd.f32 %v2000_v24, %v1912_v31 }
 0x2f7   : > { %v2047_v23 = vmul.f32 %v3837_v15, %v2001_v35 }
 0x2f8   : > { %v1825_v20 = vpop.f32.mrf.mxu2 }
 0x2f9   : > { %v2083_v34 = vadd.f32 %v3842_v12, %v2047_v23  ;;  %v1826_v41 = vadd.f32 %v1825_v20, %v1737_v48  ;;  %v1914_v16 = vpop.f32.mrf.mxu3 }
 0x2fa   : > { %v1738_v59 = vpop.f32.mrf.mxu1 }
 0x2fb   : > { %v2115_v36 = vmax.f32 %v2083_v34, 0.0  ;;  %v1915_v4 = vadd.f32 %v1914_v16, %v1826_v41  ;;  %v1739_v50 = vadd.f32 %v1738_v59, %v3809_v3 }
 0x2fc   : > { %v2005_v40 = vpop.f32.mrf.mxu0 }
 0x2fd   : > { %2147 = vst [vmem:[%s3848_s10 + $0xc8] sm:$0xff] %v2115_v36  ;;  %v2004_v7 = vadd.f32 %v2003_v38, %v1915_v4 }
 0x2ff   : > { %v2048_v51 = vmul.f32 %v3837_v15, %v2004_v7 }
 0x300   : > { %v1827_v19 = vpop.f32.mrf.mxu2 }
 0x301   : > { %v2084_v32 = vadd.f32 %v3842_v12, %v2048_v51  ;;  %v1828_v58 = vadd.f32 %v1827_v19, %v1739_v50  ;;  %v1916_v26 = vpop.f32.mrf.mxu3 }
 0x302   : > { %v1741_v1 = vpop.f32.mrf.mxu1 }
 0x303   : > { %v2116_v10 = vmax.f32 %v2084_v32, 0.0  ;;  %v1917_v27 = vadd.f32 %v1916_v26, %v1828_v58  ;;  %v1742_v13 = vadd.f32 %v1741_v1, %v3814_v39 }
 0x304   : > { %v2008_v63 = vpop.f32.mrf.mxu0 }
 0x305   : > { %2148 = vst [vmem:[%s3848_s10 + $0xd0] sm:$0xff] %v2116_v10  ;;  %v2006_v21 = vadd.f32 %v2005_v40, %v1917_v27 }
 0x307   : > { %v2049_v62 = vmul.f32 %v3837_v15, %v2006_v21 }
 0x308   : > { %v1830_v5 = vpop.f32.mrf.mxu2 }
 0x309   : > { %v2085_v22 = vadd.f32 %v3842_v12, %v2049_v62  ;;  %v1831_v3 = vadd.f32 %v1830_v5, %v1742_v13  ;;  %v1919_v44 = vpop.f32.mrf.mxu3 }
 0x30a   : > { %v1743_v46 = vpop.f32.mrf.mxu1 }
 0x30b   : > { %v2117_v30 = vmax.f32 %v2085_v22, 0.0  ;;  %v1920_v33 = vadd.f32 %v1919_v44, %v1831_v3  ;;  %v1744_v25 = vadd.f32 %v1743_v46, %v3819_v0 }
 0x30c   : > { %v2010_v37 = vpop.f32.mrf.mxu0 }
 0x30d   : > { %2149 = vst [vmem:[%s3848_s10 + $0xd8] sm:$0xff] %v2117_v30  ;;  %v2009_v28 = vadd.f32 %v2008_v63, %v1920_v33 }
 0x30f   : > { %v2050_v9 = vmul.f32 %v3837_v15, %v2009_v28 }
 0x310   : > { %v1832_v52 = vpop.f32.mrf.mxu2 }
 0x311   : > { %v2086_v45 = vadd.f32 %v3842_v12, %v2050_v9  ;;  %v1833_v39 = vadd.f32 %v1832_v52, %v1744_v25  ;;  %v1921_v2 = vpop.f32.mrf.mxu3 }
 0x312   : > { %v1746_v17 = vpop.f32.mrf.mxu1 }
 0x313   : > { %v2118_v56 = vmax.f32 %v2086_v45, 0.0  ;;  %v1922_v53 = vadd.f32 %v1921_v2, %v1833_v39  ;;  %v1747_v61 = vadd.f32 %v1746_v17, %v3824_v54 }
 0x314   : > { %v2013_v6 = vpop.f32.mrf.mxu0 }
 0x315   : > { %2150 = vst [vmem:[%s3848_s10 + $0xe0] sm:$0xff] %v2118_v56  ;;  %v2011_v43 = vadd.f32 %v2010_v37, %v1922_v53 }
 0x317   : > { %v2051_v55 = vmul.f32 %v3837_v15, %v2011_v43 }
 0x318   : > { %v1835_v29 = vpop.f32.mrf.mxu2 }
 0x319   : > { %v2087_v24 = vadd.f32 %v3842_v12, %v2051_v55  ;;  %v1836_v0 = vadd.f32 %v1835_v29, %v1747_v61  ;;  %v1924_v11 = vpop.f32.mrf.mxu3 }
 0x31a   : > { %v1748_v42 = vpop.f32.mrf.mxu1 }
 0x31b   : > { %v2119_v60 = vmax.f32 %v2087_v24, 0.0  ;;  %v1925_v14 = vadd.f32 %v1924_v11, %v1836_v0  ;;  %v1749_v47 = vadd.f32 %v1748_v42, %v3829_v57 }
 0x31c   : > { %v2015_v48 = vpop.f32.mrf.mxu0 }
 0x31d   : > { %2151 = vst [vmem:[%s3848_s10 + $0xe8] sm:$0xff] %v2119_v60  ;;  %v2014_v49 = vadd.f32 %v2013_v6, %v1925_v14 }
 0x31f   : > { %v2052_v18 = vmul.f32 %v3837_v15, %v2014_v49 }
 0x320   : > { %v1837_v8 = vpop.f32.mrf.mxu2 }
 0x321   : > { %v2088_v54 = vadd.f32 %v3842_v12, %v2052_v18  ;;  %v1838_v31 = vadd.f32 %v1837_v8, %v1749_v47  ;;  %v1926_v38 = vpop.f32.mrf.mxu3 }
 0x323   : > { %v2120_v35 = vmax.f32 %v2088_v54, 0.0  ;;  %v1927_v23 = vadd.f32 %v1926_v38, %v1838_v31 }
 0x325   : > { %2152 = vst [vmem:[%s3848_s10 + $0xf0] sm:$0xff] %v2120_v35  ;;  %v2016_v20 = vadd.f32 %v2015_v48, %v1927_v23 }
 0x327   : > { %v2053_v34 = vmul.f32 %v3837_v15, %v2016_v20 }
 0x329   : > { %v2089_v41 = vadd.f32 %v3842_v12, %v2053_v34 }
 0x32b   : > { %v2121_v16 = vmax.f32 %v2089_v41, 0.0 }
 0x32d   : > { %2153 = vst [vmem:[%s3848_s10 + $0xf8] sm:$0xff] %v2121_v16 }
 0x32e   : > { %s2813_s7 = sshll.u32 %s3174_s18, 1  ;;  %s2814_s24 = sshll.u32 %s3178_s19, 6 }
 0x32f   : > { %s2166_s28 = sadd.s32 %s2814_s24, %s2813_s7  ;;  %s2179_s27 = sshll.u32 %s3848_s10, 4  ;;  %s2180_s27 = int_to_ptr.vmem [resolvable:$true] %s2179_s27 }
 0x330   : > { %s2815_s1 = sshll.u32 %s2166_s28, 3  ;;  %s3201_s20 = smov 256  }
 0x331   : > { %s2168_s12 = scalar_lea.hbm %s4058_s4, %s2815_s1  ;;  %2985 = sst [smem:[#allocation11]] (%p3304_p9), %s3201_s20 }
 0x332   : > { %s2181_s13 = sshll.u32 %s2168_s12, 4  ;;  %s3202_s26 = smov 512   ;;  %s2182_s13 = int_to_ptr.hbm [resolvable:$true] %s2181_s13 }
 0x333   : > { %2986 = sst [smem:[#allocation11 + $0x1]] (%p3304_p9), %s3202_s26  ;;  %s3203_s18 = smov 2  }
 0x334   : > { %2987 = sst [smem:[#allocation11 + $0x2]] (%p3304_p9), %s3203_s18  ;;  %s3204_s19 = smov 128  }
 0x335   : > { %2988 = sst [smem:[#allocation11 + $0x3]] (%p3304_p9), %s3204_s19  ;;  %s3205_s9 = smov 8  }
 0x336   : > { %2989 = sst [smem:[#allocation11 + $0x4]] (%p3304_p9), %s3204_s19  ;;  %s3206_s23 = smov [#allocation10]  }
 0x337   : > { %2990 = sst [smem:[#allocation11 + $0x5]] (%p3304_p9), %s3205_s9  ;;  %s3207_s14 = smov 0  }
 0x338   : > { %2991 = dma.general (%p3304_p9), %s2180_s27, 4096, %s2182_s13, %s2155_s11, %s3206_s23, [#allocation11], %s3207_s14, 0  }
 0x339 PF: > { %p3003_p3 = scmp.ge.s32.totalorder %s3190_s22, 2  ;;  %s2209_s21 = sand.u32 1, %s3162_s15  }
 0x33a   : > { %s2210_s29 = scalar_lea.sflag [#allocation4], %s2209_s21 }
 0x33b   : > { %p2998_p6 = pnand %p3003_p3, %p3311_p13 }
 0x33d   : > { %p2999_p7 = pneg %p2998_p6 }
 0x33f   : > { %3157 = dma.done.wait (%p2999_p7), %s2210_s29, 4096  }
 0x340   : > { %3159 = vsyncadd (%p2999_p7), %s2210_s29, 4294963200  ;;  %s21_s22 = sadd.s32 1, %s3190_s22   ;;  %s4156_s30 = sld [smem:[#allocation16_spill]] }
 0x341   : > { %p18_p8 = scmp.ge.s32.totalorder %s21_s22, 6   ;;  %s4157_s17 = sld [smem:[#allocation22_spill]] }
 0x342   : > { %s4158_s18 = sld [smem:[#allocation17_spill]]  ;;  %s4162_s15 = smov %s3166_s16 }
 0x343   : > { %s4159_s19 = sld [smem:[#allocation18_spill]]  ;;  %20 = sbr.rel (!%p18_p8) target bundleno = 10 (0xa), region = 95 }
 0x344   : > { %s4160_s20 = sld [smem:[#allocation19_spill]] }
 0x345   : > { %s4161_s21 = sld [smem:[#allocation20_spill]] }
 0x346   : > { %s4163_s16 = smov %s4156_s30 }
 0x348   :  { %2216 = vsyncpa [#allocation3], 1 }
 0x349   :  { %2218 = vsyncpa [#allocation3 + $0x1], 1 }
 0x34a   :  { %2219 = vsyncpa [#allocation6], 1 }
 0x34b   :  { %2220 = vsyncpa [#allocation4], 1 }
 0x34c   :  { %2222 = vsyncpa [#allocation4 + $0x1], 1 }

</bundles_post_ra>
